<compile_context>
chip_gen: v6e
topology: v6e:2x2x1
jax: 0.10.0
libtpu: 0.0.40
codegen_flags: <defaults>
</compile_context>

<pallas_src>
import functools

import jax
import jax.numpy as jnp
from jax.experimental import pallas as pl
from jax.experimental.pallas import tpu as pltpu

EPS = 1e-5  # BatchNorm2d default eps


def residual_block_kernel(xp_ref, w1_ref, w2_ref,
                          g1_ref, b1_ref, g2_ref, b2_ref, a_ref,
                          o_ref, *, channels):
    N, Hp4, WC = xp_ref.shape
    H = Hp4 - 4
    C = channels
    cnt_inv = 1.0 / float(N * H * (WC // C))        # 1 / (N*H*W) per-channel count

    # Channel-grouping matrix: G[l1, l2] = 1 iff lanes l1 and l2 hold the same
    # channel (lane = w*C + c).  (1,WC)@G sums a per-lane statistic over the W
    # replicas of each channel and broadcasts it back lane-dense, all on the MXU.
    ri = jax.lax.broadcasted_iota(jnp.int32, (WC, WC), 0)
    ci = jax.lax.broadcasted_iota(jnp.int32, (WC, WC), 1)
    G = ((ri % C) == (ci % C)).astype(jnp.float32)

    # Block1's output is computed on H+2 rows (spatial rows -1..H); rows 0 and
    # H+1 act as conv2's zero padding and must be (re-)zeroed with this mask.
    j = jax.lax.broadcasted_iota(jnp.int32, (H + 2, WC), 0)
    rowmask = ((j >= 1) & (j <= H)).astype(jnp.float32)

    def conv3(x, w_ref, rows):
        # x: (rows + 2, WC) slab, w_ref: (3, WC, WC) band weights -> (rows, WC).
        return (jnp.dot(x[0:rows], w_ref[0], preferred_element_type=jnp.float32)
                + jnp.dot(x[1:rows + 1], w_ref[1], preferred_element_type=jnp.float32)
                + jnp.dot(x[2:rows + 2], w_ref[2], preferred_element_type=jnp.float32))

    # ---- block1 conv + BN1 statistics (single pass) ----
    ys = []
    s1 = jnp.zeros((1, WC), jnp.float32)
    q1 = jnp.zeros((1, WC), jnp.float32)
    for n in range(N):
        xs = xp_ref[n]                                   # (H+4, WC)
        y = conv3(xs, w1_ref, H + 2) * rowmask           # (H+2, WC), pad rows zero
        s1 = s1 + jnp.sum(y, axis=0, keepdims=True)
        q1 = q1 + jnp.sum(y * y, axis=0, keepdims=True)
        ys.append(y)

    mean1 = jnp.dot(s1, G, preferred_element_type=jnp.float32) * cnt_inv
    msq1 = jnp.dot(q1, G, preferred_element_type=jnp.float32) * cnt_inv
    var1 = msq1 - mean1 * mean1
    scale1 = g1_ref[...] * jax.lax.rsqrt(var1 + EPS)
    shift1 = b1_ref[...] - mean1 * scale1
    alpha = a_ref[...]

    # ---- BN1 apply + PReLU + block2 conv + BN2 statistics ----
    zs = []
    s2 = jnp.zeros((1, WC), jnp.float32)
    q2 = jnp.zeros((1, WC), jnp.float32)
    for n in range(N):
        y = ys[n] * scale1 + shift1
        y = jnp.where(y > 0, y, alpha * y)
        y = y * rowmask                                  # re-zero conv2's halo rows
        z = conv3(y, w2_ref, H)                          # (H, WC)
        s2 = s2 + jnp.sum(z, axis=0, keepdims=True)
        q2 = q2 + jnp.sum(z * z, axis=0, keepdims=True)
        zs.append(z)

    mean2 = jnp.dot(s2, G, preferred_element_type=jnp.float32) * cnt_inv
    msq2 = jnp.dot(q2, G, preferred_element_type=jnp.float32) * cnt_inv
    var2 = msq2 - mean2 * mean2
    scale2 = g2_ref[...] * jax.lax.rsqrt(var2 + EPS)
    shift2 = b2_ref[...] - mean2 * scale2

    # ---- BN2 apply + residual add + lane-dense store ----
    for n in range(N):
        o_ref[n] = zs[n] * scale2 + shift2 + xp_ref[n][2:H + 2]


def _band_weights(w_pt, W):
    """Fold the 3x3 conv's W-direction taps (and W zero-padding) into three
    block-tridiagonal (W*Cin, W*Cout) matrices, one per kernel row dh."""
    w_hw = jnp.transpose(w_pt, (2, 3, 1, 0)).astype(jnp.float32)   # (3,3,Cin,Cout)
    mats = []
    for dh in range(3):
        m = 0.0
        for dw in range(3):
            # w_out = w_in + 1 - dw  <=>  dw = w_in - w_out + 1
            sel = jnp.eye(W, k=1 - dw, dtype=jnp.float32)
            m = m + jnp.kron(sel, w_hw[dh, dw])
        mats.append(m)
    return jnp.stack(mats)                                          # (3, W*Ci, W*Co)


def residual_block(x_nchw, params):
    """Wrapper: NCHW in / NCHW out, matching the PyTorch module."""
    N, C, H, W = x_nchw.shape
    WC = W * C

    # NCHW -> NHWC -> lane-dense (N, H, W*C); pad H by 2 zero rows per side so
    # both conv halos resolve to static row slices inside the kernel.  The same
    # (single) input also provides the residual term.
    x = jnp.transpose(x_nchw, (0, 2, 3, 1)).astype(jnp.float32).reshape(N, H, WC)
    xp = jnp.pad(x, ((0, 0), (2, 2), (0, 0)))

    w1b = _band_weights(params["w1"], W)                 # (3, WC, WC)
    w2b = _band_weights(params["w2"], W)

    def lane(p):                                         # per-channel -> per-lane
        return jnp.tile(p.astype(jnp.float32).reshape(-1), W).reshape(1, WC)

    g1, b1 = lane(params["g1"]), lane(params["b1"])
    g2, b2 = lane(params["g2"]), lane(params["b2"])
    alpha = lane(params["alpha"])

    kernel = functools.partial(residual_block_kernel, channels=C)
    full3 = lambda shape: pl.BlockSpec(shape, lambda i: (0, 0, 0))
    full2 = lambda shape: pl.BlockSpec(shape, lambda i: (0, 0))

    out = pl.pallas_call(
        kernel,
        out_shape=jax.ShapeDtypeStruct((N, H, WC), jnp.float32),
        grid_spec=pltpu.PrefetchScalarGridSpec(
            num_scalar_prefetch=0,
            grid=(1,),
            in_specs=[
                full3((N, H + 4, WC)),        # H-padded input (halo + residual)
                full3((3, WC, WC)),           # conv1 band weights
                full3((3, WC, WC)),           # conv2 band weights
                full2((1, WC)), full2((1, WC)),   # gamma1, beta1 (lane-tiled)
                full2((1, WC)), full2((1, WC)),   # gamma2, beta2
                full2((1, WC)),                   # PReLU alpha
            ],
            out_specs=full3((N, H, WC)),
        ),
        compiler_params=pltpu.CompilerParams(
            dimension_semantics=("arbitrary",),
            vmem_limit_bytes=32 * 1024 * 1024),
    )(xp, w1b, w2b, g1, b1, g2, b2, alpha)

    return jnp.transpose(out.reshape(N, H, W, C), (0, 3, 1, 2))     # -> NCHW


def residual_block_ref(x_nchw, params):
    """Pure-JAX reference (for correctness check only)."""
    x = jnp.transpose(x_nchw, (0, 2, 3, 1)).astype(jnp.float32)

    def conv(v, w_pt):
        w = jnp.transpose(w_pt, (2, 3, 1, 0)).astype(jnp.float32)
        return jax.lax.conv_general_dilated(
            v, w, (1, 1), "SAME",
            dimension_numbers=("NHWC", "HWIO", "NHWC"),
            precision=jax.lax.Precision.HIGHEST)

    def bn(v, g, b):
        m = jnp.mean(v, axis=(0, 1, 2), keepdims=True)
        var = jnp.mean((v - m) ** 2, axis=(0, 1, 2), keepdims=True)
        return ((v - m) * jax.lax.rsqrt(var + EPS)
                * g.reshape(1, 1, 1, -1) + b.reshape(1, 1, 1, -1))

    y = bn(conv(x, params["w1"]), params["g1"], params["b1"])
    a = params["alpha"].reshape(1, 1, 1, -1)
    y = jnp.where(y > 0, y, a * y)
    z = bn(conv(y, params["w2"]), params["g2"], params["b2"])
    return jnp.transpose(z + x, (0, 3, 1, 2))


if __name__ == "__main__":
    # Shapes consistent with ResidualBlock(in_channels=8); W*C = 128 (lane-dense).
    N, C, H, W = 2, 8, 16, 16
    key = jax.random.PRNGKey(0)
    ks = jax.random.split(key, 8)

    params = {
        # Conv2d weights, PyTorch layout (Cout, Cin, kH, kW), bias=False
        "w1": 0.1 * jax.random.normal(ks[0], (C, C, 3, 3), jnp.float32),
        "w2": 0.1 * jax.random.normal(ks[1], (C, C, 3, 3), jnp.float32),
        # BatchNorm affine params
        "g1": 1.0 + 0.1 * jax.random.normal(ks[2], (C,), jnp.float32),
        "b1": 0.1 * jax.random.normal(ks[3], (C,), jnp.float32),
        "g2": 1.0 + 0.1 * jax.random.normal(ks[4], (C,), jnp.float32),
        "b2": 0.1 * jax.random.normal(ks[5], (C,), jnp.float32),
        # PReLU per-channel slope (init 0.25, perturbed)
        "alpha": 0.25 + 0.05 * jax.random.normal(ks[6], (C,), jnp.float32),
    }
    x = jax.random.normal(ks[7], (N, C, H, W), jnp.float32)

    out = jax.block_until_ready(residual_block(x, params))
    ref = jax.block_until_ready(residual_block_ref(x, params))

    assert out.shape == (N, C, H, W)
    assert jnp.allclose(out, ref, atol=1e-3, rtol=1e-3), (
        float(jnp.max(jnp.abs(out - ref))))
    print("KERNEL_OK")
</pallas_src>

<mosaic_0001>
module attributes {stable_mosaic.version = 11 : i64} {
  func.func @residual_block_kernel(%arg0: i32, %arg1: memref<2x20x128xf32, #tpu.memory_space<vmem>>, %arg2: memref<3x128x128xf32, #tpu.memory_space<vmem>>, %arg3: memref<3x128x128xf32, #tpu.memory_space<vmem>>, %arg4: memref<1x128xf32, #tpu.memory_space<vmem>>, %arg5: memref<1x128xf32, #tpu.memory_space<vmem>>, %arg6: memref<1x128xf32, #tpu.memory_space<vmem>>, %arg7: memref<1x128xf32, #tpu.memory_space<vmem>>, %arg8: memref<1x128xf32, #tpu.memory_space<vmem>>, %arg9: memref<2x16x128xf32, #tpu.memory_space<vmem>>) attributes {dimension_semantics = [#tpu.dimension_semantics<arbitrary>], iteration_bounds = array<i64: 1>, scalar_prefetch = 0 : i64, scratch_operands = 0 : i64, tpu.core_type = #tpu.core_type<tc>, window_params = [{pipeline_mode = #tpu.pipeline_mode<synchronous>, transform_indices = @transform_0, window_bounds = array<i64: 2, 20, 128>}, {pipeline_mode = #tpu.pipeline_mode<synchronous>, transform_indices = @transform_1, window_bounds = array<i64: 3, 128, 128>}, {pipeline_mode = #tpu.pipeline_mode<synchronous>, transform_indices = @transform_2, window_bounds = array<i64: 3, 128, 128>}, {pipeline_mode = #tpu.pipeline_mode<synchronous>, transform_indices = @transform_3, window_bounds = array<i64: 1, 128>}, {pipeline_mode = #tpu.pipeline_mode<synchronous>, transform_indices = @transform_4, window_bounds = array<i64: 1, 128>}, {pipeline_mode = #tpu.pipeline_mode<synchronous>, transform_indices = @transform_5, window_bounds = array<i64: 1, 128>}, {pipeline_mode = #tpu.pipeline_mode<synchronous>, transform_indices = @transform_6, window_bounds = array<i64: 1, 128>}, {pipeline_mode = #tpu.pipeline_mode<synchronous>, transform_indices = @transform_7, window_bounds = array<i64: 1, 128>}, {pipeline_mode = #tpu.pipeline_mode<synchronous>, transform_indices = @transform_8, window_bounds = array<i64: 2, 16, 128>}]} {
    %0 = tpu.iota {dimensions = array<i32: 0>} : vector<128x128xi32>
    %1 = tpu.iota {dimensions = array<i32: 1>} : vector<128x128xi32>
    %c8_i32 = arith.constant 8 : i32
    %c0_i32 = arith.constant 0 : i32
    %2 = arith.cmpi eq, %c8_i32, %c0_i32 : i32
    %c1_i32 = arith.constant 1 : i32
    %3 = arith.select %2, %c1_i32, %c8_i32 : i32
    %4 = vector.broadcast %3 : i32 to vector<128x128xi32>
    %5 = arith.remsi %0, %4 : vector<128x128xi32>
    %c0_i32_0 = arith.constant 0 : i32
    %6 = vector.broadcast %c0_i32_0 : i32 to vector<128x128xi32>
    %7 = arith.cmpi ne, %5, %6 : vector<128x128xi32>
    %c0_i32_1 = arith.constant 0 : i32
    %8 = vector.broadcast %c0_i32_1 : i32 to vector<128x128xi32>
    %9 = arith.cmpi slt, %5, %8 : vector<128x128xi32>
    %c0_i32_2 = arith.constant 0 : i32
    %10 = arith.cmpi slt, %3, %c0_i32_2 : i32
    %11 = vector.broadcast %10 : i1 to vector<128x128xi1>
    %12 = vector.broadcast %11 : vector<128x128xi1> to vector<128x128xi1>
    %13 = arith.xori %9, %12 : vector<128x128xi1>
    %14 = arith.andi %13, %7 : vector<128x128xi1>
    %15 = vector.broadcast %3 : i32 to vector<128x128xi32>
    %16 = arith.addi %5, %15 : vector<128x128xi32>
    %17 = arith.select %14, %16, %5 : vector<128x128xi1>, vector<128x128xi32>
    %c8_i32_3 = arith.constant 8 : i32
    %c0_i32_4 = arith.constant 0 : i32
    %18 = arith.cmpi eq, %c8_i32_3, %c0_i32_4 : i32
    %c1_i32_5 = arith.constant 1 : i32
    %19 = arith.select %18, %c1_i32_5, %c8_i32_3 : i32
    %20 = vector.broadcast %19 : i32 to vector<128x128xi32>
    %21 = arith.remsi %1, %20 : vector<128x128xi32>
    %c0_i32_6 = arith.constant 0 : i32
    %22 = vector.broadcast %c0_i32_6 : i32 to vector<128x128xi32>
    %23 = arith.cmpi ne, %21, %22 : vector<128x128xi32>
    %c0_i32_7 = arith.constant 0 : i32
    %24 = vector.broadcast %c0_i32_7 : i32 to vector<128x128xi32>
    %25 = arith.cmpi slt, %21, %24 : vector<128x128xi32>
    %c0_i32_8 = arith.constant 0 : i32
    %26 = arith.cmpi slt, %19, %c0_i32_8 : i32
    %27 = vector.broadcast %26 : i1 to vector<128x128xi1>
    %28 = vector.broadcast %27 : vector<128x128xi1> to vector<128x128xi1>
    %29 = arith.xori %25, %28 : vector<128x128xi1>
    %30 = arith.andi %29, %23 : vector<128x128xi1>
    %31 = vector.broadcast %19 : i32 to vector<128x128xi32>
    %32 = arith.addi %21, %31 : vector<128x128xi32>
    %33 = arith.select %30, %32, %21 : vector<128x128xi1>, vector<128x128xi32>
    %34 = arith.cmpi eq, %17, %33 : vector<128x128xi32>
    %35 = arith.extui %34 : vector<128x128xi1> to vector<128x128xi32>
    %36 = arith.sitofp %35 : vector<128x128xi32> to vector<128x128xf32>
    %37 = tpu.iota {dimensions = array<i32: 0>} : vector<18x128xi32>
    %c1_i32_9 = arith.constant 1 : i32
    %38 = vector.broadcast %c1_i32_9 : i32 to vector<18x128xi32>
    %39 = arith.cmpi sge, %37, %38 : vector<18x128xi32>
    %c16_i32 = arith.constant 16 : i32
    %40 = vector.broadcast %c16_i32 : i32 to vector<18x128xi32>
    %41 = arith.cmpi sle, %37, %40 : vector<18x128xi32>
    %42 = arith.andi %39, %41 : vector<18x128xi1>
    %43 = arith.extui %42 : vector<18x128xi1> to vector<18x128xi32>
    %44 = arith.sitofp %43 : vector<18x128xi32> to vector<18x128xf32>
    %cst = arith.constant 0.000000e+00 : f32
    %45 = vector.broadcast %cst : f32 to vector<1x128xf32>
    %cst_10 = arith.constant 0.000000e+00 : f32
    %46 = vector.broadcast %cst_10 : f32 to vector<1x128xf32>
    %c0 = arith.constant 0 : index
    %c0_11 = arith.constant 0 : index
    %c0_12 = arith.constant 0 : index
    %47 = vector.load %arg1[%c0, %c0_11, %c0_12] : memref<2x20x128xf32, #tpu.memory_space<vmem>>, vector<1x20x128xf32>
    %48 = vector.shape_cast %47 : vector<1x20x128xf32> to vector<20x128xf32>
    %49 = vector.extract_strided_slice %48 {offsets = [0, 0], sizes = [18, 128], strides = [1, 1]} : vector<20x128xf32> to vector<18x128xf32>
    %c0_13 = arith.constant 0 : index
    %c0_14 = arith.constant 0 : index
    %c0_15 = arith.constant 0 : index
    %50 = vector.load %arg2[%c0_13, %c0_14, %c0_15] : memref<3x128x128xf32, #tpu.memory_space<vmem>>, vector<1x128x128xf32>
    %51 = vector.shape_cast %50 : vector<1x128x128xf32> to vector<128x128xf32>
    %cst_16 = arith.constant dense<0.000000e+00> : vector<18x128xf32>
    %52 = tpu.matmul %49, %51, %cst_16 {dimension_numbers = #tpu.dot_dimension_numbers<[1], [0], [0], [1], [0, 0, 1, 1], [], []>} : vector<18x128xf32>, vector<128x128xf32>, vector<18x128xf32> -> vector<18x128xf32>
    %53 = vector.extract_strided_slice %48 {offsets = [1, 0], sizes = [18, 128], strides = [1, 1]} : vector<20x128xf32> to vector<18x128xf32>
    %c1 = arith.constant 1 : index
    %c0_17 = arith.constant 0 : index
    %c0_18 = arith.constant 0 : index
    %54 = vector.load %arg2[%c1, %c0_17, %c0_18] : memref<3x128x128xf32, #tpu.memory_space<vmem>>, vector<1x128x128xf32>
    %55 = vector.shape_cast %54 : vector<1x128x128xf32> to vector<128x128xf32>
    %cst_19 = arith.constant dense<0.000000e+00> : vector<18x128xf32>
    %56 = tpu.matmul %53, %55, %cst_19 {dimension_numbers = #tpu.dot_dimension_numbers<[1], [0], [0], [1], [0, 0, 1, 1], [], []>} : vector<18x128xf32>, vector<128x128xf32>, vector<18x128xf32> -> vector<18x128xf32>
    %57 = arith.addf %52, %56 : vector<18x128xf32>
    %58 = vector.extract_strided_slice %48 {offsets = [2, 0], sizes = [18, 128], strides = [1, 1]} : vector<20x128xf32> to vector<18x128xf32>
    %c2 = arith.constant 2 : index
    %c0_20 = arith.constant 0 : index
    %c0_21 = arith.constant 0 : index
    %59 = vector.load %arg2[%c2, %c0_20, %c0_21] : memref<3x128x128xf32, #tpu.memory_space<vmem>>, vector<1x128x128xf32>
    %60 = vector.shape_cast %59 : vector<1x128x128xf32> to vector<128x128xf32>
    %cst_22 = arith.constant dense<0.000000e+00> : vector<18x128xf32>
    %61 = tpu.matmul %58, %60, %cst_22 {dimension_numbers = #tpu.dot_dimension_numbers<[1], [0], [0], [1], [0, 0, 1, 1], [], []>} : vector<18x128xf32>, vector<128x128xf32>, vector<18x128xf32> -> vector<18x128xf32>
    %62 = arith.addf %57, %61 : vector<18x128xf32>
    %63 = arith.mulf %62, %44 : vector<18x128xf32>
    %cst_23 = arith.constant dense<0.000000e+00> : vector<128xf32>
    %64 = vector.multi_reduction <add>, %63, %cst_23 [0] : vector<18x128xf32> to vector<128xf32>
    %65 = vector.shape_cast %64 : vector<128xf32> to vector<1x128xf32>
    %66 = arith.addf %45, %65 : vector<1x128xf32>
    %67 = arith.mulf %63, %63 : vector<18x128xf32>
    %cst_24 = arith.constant dense<0.000000e+00> : vector<128xf32>
    %68 = vector.multi_reduction <add>, %67, %cst_24 [0] : vector<18x128xf32> to vector<128xf32>
    %69 = vector.shape_cast %68 : vector<128xf32> to vector<1x128xf32>
    %70 = arith.addf %46, %69 : vector<1x128xf32>
    %c1_25 = arith.constant 1 : index
    %c0_26 = arith.constant 0 : index
    %c0_27 = arith.constant 0 : index
    %71 = vector.load %arg1[%c1_25, %c0_26, %c0_27] : memref<2x20x128xf32, #tpu.memory_space<vmem>>, vector<1x20x128xf32>
    %72 = vector.shape_cast %71 : vector<1x20x128xf32> to vector<20x128xf32>
    %73 = vector.extract_strided_slice %72 {offsets = [0, 0], sizes = [18, 128], strides = [1, 1]} : vector<20x128xf32> to vector<18x128xf32>
    %c0_28 = arith.constant 0 : index
    %c0_29 = arith.constant 0 : index
    %c0_30 = arith.constant 0 : index
    %74 = vector.load %arg2[%c0_28, %c0_29, %c0_30] : memref<3x128x128xf32, #tpu.memory_space<vmem>>, vector<1x128x128xf32>
    %75 = vector.shape_cast %74 : vector<1x128x128xf32> to vector<128x128xf32>
    %cst_31 = arith.constant dense<0.000000e+00> : vector<18x128xf32>
    %76 = tpu.matmul %73, %75, %cst_31 {dimension_numbers = #tpu.dot_dimension_numbers<[1], [0], [0], [1], [0, 0, 1, 1], [], []>} : vector<18x128xf32>, vector<128x128xf32>, vector<18x128xf32> -> vector<18x128xf32>
    %77 = vector.extract_strided_slice %72 {offsets = [1, 0], sizes = [18, 128], strides = [1, 1]} : vector<20x128xf32> to vector<18x128xf32>
    %c1_32 = arith.constant 1 : index
    %c0_33 = arith.constant 0 : index
    %c0_34 = arith.constant 0 : index
    %78 = vector.load %arg2[%c1_32, %c0_33, %c0_34] : memref<3x128x128xf32, #tpu.memory_space<vmem>>, vector<1x128x128xf32>
    %79 = vector.shape_cast %78 : vector<1x128x128xf32> to vector<128x128xf32>
    %cst_35 = arith.constant dense<0.000000e+00> : vector<18x128xf32>
    %80 = tpu.matmul %77, %79, %cst_35 {dimension_numbers = #tpu.dot_dimension_numbers<[1], [0], [0], [1], [0, 0, 1, 1], [], []>} : vector<18x128xf32>, vector<128x128xf32>, vector<18x128xf32> -> vector<18x128xf32>
    %81 = arith.addf %76, %80 : vector<18x128xf32>
    %82 = vector.extract_strided_slice %72 {offsets = [2, 0], sizes = [18, 128], strides = [1, 1]} : vector<20x128xf32> to vector<18x128xf32>
    %c2_36 = arith.constant 2 : index
    %c0_37 = arith.constant 0 : index
    %c0_38 = arith.constant 0 : index
    %83 = vector.load %arg2[%c2_36, %c0_37, %c0_38] : memref<3x128x128xf32, #tpu.memory_space<vmem>>, vector<1x128x128xf32>
    %84 = vector.shape_cast %83 : vector<1x128x128xf32> to vector<128x128xf32>
    %cst_39 = arith.constant dense<0.000000e+00> : vector<18x128xf32>
    %85 = tpu.matmul %82, %84, %cst_39 {dimension_numbers = #tpu.dot_dimension_numbers<[1], [0], [0], [1], [0, 0, 1, 1], [], []>} : vector<18x128xf32>, vector<128x128xf32>, vector<18x128xf32> -> vector<18x128xf32>
    %86 = arith.addf %81, %85 : vector<18x128xf32>
    %87 = arith.mulf %86, %44 : vector<18x128xf32>
    %cst_40 = arith.constant dense<0.000000e+00> : vector<128xf32>
    %88 = vector.multi_reduction <add>, %87, %cst_40 [0] : vector<18x128xf32> to vector<128xf32>
    %89 = vector.shape_cast %88 : vector<128xf32> to vector<1x128xf32>
    %90 = arith.addf %66, %89 : vector<1x128xf32>
    %91 = arith.mulf %87, %87 : vector<18x128xf32>
    %cst_41 = arith.constant dense<0.000000e+00> : vector<128xf32>
    %92 = vector.multi_reduction <add>, %91, %cst_41 [0] : vector<18x128xf32> to vector<128xf32>
    %93 = vector.shape_cast %92 : vector<128xf32> to vector<1x128xf32>
    %94 = arith.addf %70, %93 : vector<1x128xf32>
    %cst_42 = arith.constant dense<0.000000e+00> : vector<1x128xf32>
    %95 = tpu.matmul %90, %36, %cst_42 {dimension_numbers = #tpu.dot_dimension_numbers<[1], [0], [0], [1], [0, 0, 1, 1], [], []>} : vector<1x128xf32>, vector<128x128xf32>, vector<1x128xf32> -> vector<1x128xf32>
    %cst_43 = arith.constant 0.001953125 : f32
    %96 = vector.broadcast %cst_43 : f32 to vector<1x128xf32>
    %97 = arith.mulf %95, %96 : vector<1x128xf32>
    %cst_44 = arith.constant dense<0.000000e+00> : vector<1x128xf32>
    %98 = tpu.matmul %94, %36, %cst_44 {dimension_numbers = #tpu.dot_dimension_numbers<[1], [0], [0], [1], [0, 0, 1, 1], [], []>} : vector<1x128xf32>, vector<128x128xf32>, vector<1x128xf32> -> vector<1x128xf32>
    %cst_45 = arith.constant 0.001953125 : f32
    %99 = vector.broadcast %cst_45 : f32 to vector<1x128xf32>
    %100 = arith.mulf %98, %99 : vector<1x128xf32>
    %101 = arith.mulf %97, %97 : vector<1x128xf32>
    %102 = arith.subf %100, %101 : vector<1x128xf32>
    %c0_46 = arith.constant 0 : index
    %c0_47 = arith.constant 0 : index
    %103 = vector.load %arg4[%c0_46, %c0_47] : memref<1x128xf32, #tpu.memory_space<vmem>>, vector<1x128xf32>
    %cst_48 = arith.constant 9.99999974E-6 : f32
    %104 = vector.broadcast %cst_48 : f32 to vector<1x128xf32>
    %105 = arith.addf %102, %104 : vector<1x128xf32>
    %106 = math.rsqrt %105 : vector<1x128xf32>
    %107 = arith.mulf %103, %106 : vector<1x128xf32>
    %c0_49 = arith.constant 0 : index
    %c0_50 = arith.constant 0 : index
    %108 = vector.load %arg5[%c0_49, %c0_50] : memref<1x128xf32, #tpu.memory_space<vmem>>, vector<1x128xf32>
    %109 = arith.mulf %97, %107 : vector<1x128xf32>
    %110 = arith.subf %108, %109 : vector<1x128xf32>
    %c0_51 = arith.constant 0 : index
    %c0_52 = arith.constant 0 : index
    %111 = vector.load %arg8[%c0_51, %c0_52] : memref<1x128xf32, #tpu.memory_space<vmem>>, vector<1x128xf32>
    %cst_53 = arith.constant 0.000000e+00 : f32
    %112 = vector.broadcast %cst_53 : f32 to vector<1x128xf32>
    %cst_54 = arith.constant 0.000000e+00 : f32
    %113 = vector.broadcast %cst_54 : f32 to vector<1x128xf32>
    %114 = vector.broadcast %107 : vector<1x128xf32> to vector<18x128xf32>
    %115 = arith.mulf %63, %114 : vector<18x128xf32>
    %116 = vector.broadcast %110 : vector<1x128xf32> to vector<18x128xf32>
    %117 = arith.addf %115, %116 : vector<18x128xf32>
    %cst_55 = arith.constant 0.000000e+00 : f32
    %118 = vector.broadcast %cst_55 : f32 to vector<18x128xf32>
    %119 = arith.cmpf ogt, %117, %118 : vector<18x128xf32>
    %120 = vector.broadcast %111 : vector<1x128xf32> to vector<18x128xf32>
    %121 = arith.mulf %120, %117 : vector<18x128xf32>
    %122 = arith.select %119, %117, %121 : vector<18x128xi1>, vector<18x128xf32>
    %123 = arith.mulf %122, %44 : vector<18x128xf32>
    %124 = vector.extract_strided_slice %123 {offsets = [0, 0], sizes = [16, 128], strides = [1, 1]} : vector<18x128xf32> to vector<16x128xf32>
    %c0_56 = arith.constant 0 : index
    %c0_57 = arith.constant 0 : index
    %c0_58 = arith.constant 0 : index
    %125 = vector.load %arg3[%c0_56, %c0_57, %c0_58] : memref<3x128x128xf32, #tpu.memory_space<vmem>>, vector<1x128x128xf32>
    %126 = vector.shape_cast %125 : vector<1x128x128xf32> to vector<128x128xf32>
    %cst_59 = arith.constant dense<0.000000e+00> : vector<16x128xf32>
    %127 = tpu.matmul %124, %126, %cst_59 {dimension_numbers = #tpu.dot_dimension_numbers<[1], [0], [0], [1], [0, 0, 1, 1], [], []>} : vector<16x128xf32>, vector<128x128xf32>, vector<16x128xf32> -> vector<16x128xf32>
    %128 = vector.extract_strided_slice %123 {offsets = [1, 0], sizes = [16, 128], strides = [1, 1]} : vector<18x128xf32> to vector<16x128xf32>
    %c1_60 = arith.constant 1 : index
    %c0_61 = arith.constant 0 : index
    %c0_62 = arith.constant 0 : index
    %129 = vector.load %arg3[%c1_60, %c0_61, %c0_62] : memref<3x128x128xf32, #tpu.memory_space<vmem>>, vector<1x128x128xf32>
    %130 = vector.shape_cast %129 : vector<1x128x128xf32> to vector<128x128xf32>
    %cst_63 = arith.constant dense<0.000000e+00> : vector<16x128xf32>
    %131 = tpu.matmul %128, %130, %cst_63 {dimension_numbers = #tpu.dot_dimension_numbers<[1], [0], [0], [1], [0, 0, 1, 1], [], []>} : vector<16x128xf32>, vector<128x128xf32>, vector<16x128xf32> -> vector<16x128xf32>
    %132 = arith.addf %127, %131 : vector<16x128xf32>
    %133 = vector.extract_strided_slice %123 {offsets = [2, 0], sizes = [16, 128], strides = [1, 1]} : vector<18x128xf32> to vector<16x128xf32>
    %c2_64 = arith.constant 2 : index
    %c0_65 = arith.constant 0 : index
    %c0_66 = arith.constant 0 : index
    %134 = vector.load %arg3[%c2_64, %c0_65, %c0_66] : memref<3x128x128xf32, #tpu.memory_space<vmem>>, vector<1x128x128xf32>
    %135 = vector.shape_cast %134 : vector<1x128x128xf32> to vector<128x128xf32>
    %cst_67 = arith.constant dense<0.000000e+00> : vector<16x128xf32>
    %136 = tpu.matmul %133, %135, %cst_67 {dimension_numbers = #tpu.dot_dimension_numbers<[1], [0], [0], [1], [0, 0, 1, 1], [], []>} : vector<16x128xf32>, vector<128x128xf32>, vector<16x128xf32> -> vector<16x128xf32>
    %137 = arith.addf %132, %136 : vector<16x128xf32>
    %cst_68 = arith.constant dense<0.000000e+00> : vector<128xf32>
    %138 = vector.multi_reduction <add>, %137, %cst_68 [0] : vector<16x128xf32> to vector<128xf32>
    %139 = vector.shape_cast %138 : vector<128xf32> to vector<1x128xf32>
    %140 = arith.addf %112, %139 : vector<1x128xf32>
    %141 = arith.mulf %137, %137 : vector<16x128xf32>
    %cst_69 = arith.constant dense<0.000000e+00> : vector<128xf32>
    %142 = vector.multi_reduction <add>, %141, %cst_69 [0] : vector<16x128xf32> to vector<128xf32>
    %143 = vector.shape_cast %142 : vector<128xf32> to vector<1x128xf32>
    %144 = arith.addf %113, %143 : vector<1x128xf32>
    %145 = vector.broadcast %107 : vector<1x128xf32> to vector<18x128xf32>
    %146 = arith.mulf %87, %145 : vector<18x128xf32>
    %147 = vector.broadcast %110 : vector<1x128xf32> to vector<18x128xf32>
    %148 = arith.addf %146, %147 : vector<18x128xf32>
    %cst_70 = arith.constant 0.000000e+00 : f32
    %149 = vector.broadcast %cst_70 : f32 to vector<18x128xf32>
    %150 = arith.cmpf ogt, %148, %149 : vector<18x128xf32>
    %151 = vector.broadcast %111 : vector<1x128xf32> to vector<18x128xf32>
    %152 = arith.mulf %151, %148 : vector<18x128xf32>
    %153 = arith.select %150, %148, %152 : vector<18x128xi1>, vector<18x128xf32>
    %154 = arith.mulf %153, %44 : vector<18x128xf32>
    %155 = vector.extract_strided_slice %154 {offsets = [0, 0], sizes = [16, 128], strides = [1, 1]} : vector<18x128xf32> to vector<16x128xf32>
    %c0_71 = arith.constant 0 : index
    %c0_72 = arith.constant 0 : index
    %c0_73 = arith.constant 0 : index
    %156 = vector.load %arg3[%c0_71, %c0_72, %c0_73] : memref<3x128x128xf32, #tpu.memory_space<vmem>>, vector<1x128x128xf32>
    %157 = vector.shape_cast %156 : vector<1x128x128xf32> to vector<128x128xf32>
    %cst_74 = arith.constant dense<0.000000e+00> : vector<16x128xf32>
    %158 = tpu.matmul %155, %157, %cst_74 {dimension_numbers = #tpu.dot_dimension_numbers<[1], [0], [0], [1], [0, 0, 1, 1], [], []>} : vector<16x128xf32>, vector<128x128xf32>, vector<16x128xf32> -> vector<16x128xf32>
    %159 = vector.extract_strided_slice %154 {offsets = [1, 0], sizes = [16, 128], strides = [1, 1]} : vector<18x128xf32> to vector<16x128xf32>
    %c1_75 = arith.constant 1 : index
    %c0_76 = arith.constant 0 : index
    %c0_77 = arith.constant 0 : index
    %160 = vector.load %arg3[%c1_75, %c0_76, %c0_77] : memref<3x128x128xf32, #tpu.memory_space<vmem>>, vector<1x128x128xf32>
    %161 = vector.shape_cast %160 : vector<1x128x128xf32> to vector<128x128xf32>
    %cst_78 = arith.constant dense<0.000000e+00> : vector<16x128xf32>
    %162 = tpu.matmul %159, %161, %cst_78 {dimension_numbers = #tpu.dot_dimension_numbers<[1], [0], [0], [1], [0, 0, 1, 1], [], []>} : vector<16x128xf32>, vector<128x128xf32>, vector<16x128xf32> -> vector<16x128xf32>
    %163 = arith.addf %158, %162 : vector<16x128xf32>
    %164 = vector.extract_strided_slice %154 {offsets = [2, 0], sizes = [16, 128], strides = [1, 1]} : vector<18x128xf32> to vector<16x128xf32>
    %c2_79 = arith.constant 2 : index
    %c0_80 = arith.constant 0 : index
    %c0_81 = arith.constant 0 : index
    %165 = vector.load %arg3[%c2_79, %c0_80, %c0_81] : memref<3x128x128xf32, #tpu.memory_space<vmem>>, vector<1x128x128xf32>
    %166 = vector.shape_cast %165 : vector<1x128x128xf32> to vector<128x128xf32>
    %cst_82 = arith.constant dense<0.000000e+00> : vector<16x128xf32>
    %167 = tpu.matmul %164, %166, %cst_82 {dimension_numbers = #tpu.dot_dimension_numbers<[1], [0], [0], [1], [0, 0, 1, 1], [], []>} : vector<16x128xf32>, vector<128x128xf32>, vector<16x128xf32> -> vector<16x128xf32>
    %168 = arith.addf %163, %167 : vector<16x128xf32>
    %cst_83 = arith.constant dense<0.000000e+00> : vector<128xf32>
    %169 = vector.multi_reduction <add>, %168, %cst_83 [0] : vector<16x128xf32> to vector<128xf32>
    %170 = vector.shape_cast %169 : vector<128xf32> to vector<1x128xf32>
    %171 = arith.addf %140, %170 : vector<1x128xf32>
    %172 = arith.mulf %168, %168 : vector<16x128xf32>
    %cst_84 = arith.constant dense<0.000000e+00> : vector<128xf32>
    %173 = vector.multi_reduction <add>, %172, %cst_84 [0] : vector<16x128xf32> to vector<128xf32>
    %174 = vector.shape_cast %173 : vector<128xf32> to vector<1x128xf32>
    %175 = arith.addf %144, %174 : vector<1x128xf32>
    %cst_85 = arith.constant dense<0.000000e+00> : vector<1x128xf32>
    %176 = tpu.matmul %171, %36, %cst_85 {dimension_numbers = #tpu.dot_dimension_numbers<[1], [0], [0], [1], [0, 0, 1, 1], [], []>} : vector<1x128xf32>, vector<128x128xf32>, vector<1x128xf32> -> vector<1x128xf32>
    %cst_86 = arith.constant 0.001953125 : f32
    %177 = vector.broadcast %cst_86 : f32 to vector<1x128xf32>
    %178 = arith.mulf %176, %177 : vector<1x128xf32>
    %cst_87 = arith.constant dense<0.000000e+00> : vector<1x128xf32>
    %179 = tpu.matmul %175, %36, %cst_87 {dimension_numbers = #tpu.dot_dimension_numbers<[1], [0], [0], [1], [0, 0, 1, 1], [], []>} : vector<1x128xf32>, vector<128x128xf32>, vector<1x128xf32> -> vector<1x128xf32>
    %cst_88 = arith.constant 0.001953125 : f32
    %180 = vector.broadcast %cst_88 : f32 to vector<1x128xf32>
    %181 = arith.mulf %179, %180 : vector<1x128xf32>
    %182 = arith.mulf %178, %178 : vector<1x128xf32>
    %183 = arith.subf %181, %182 : vector<1x128xf32>
    %c0_89 = arith.constant 0 : index
    %c0_90 = arith.constant 0 : index
    %184 = vector.load %arg6[%c0_89, %c0_90] : memref<1x128xf32, #tpu.memory_space<vmem>>, vector<1x128xf32>
    %cst_91 = arith.constant 9.99999974E-6 : f32
    %185 = vector.broadcast %cst_91 : f32 to vector<1x128xf32>
    %186 = arith.addf %183, %185 : vector<1x128xf32>
    %187 = math.rsqrt %186 : vector<1x128xf32>
    %188 = arith.mulf %184, %187 : vector<1x128xf32>
    %c0_92 = arith.constant 0 : index
    %c0_93 = arith.constant 0 : index
    %189 = vector.load %arg7[%c0_92, %c0_93] : memref<1x128xf32, #tpu.memory_space<vmem>>, vector<1x128xf32>
    %190 = arith.mulf %178, %188 : vector<1x128xf32>
    %191 = arith.subf %189, %190 : vector<1x128xf32>
    %192 = vector.broadcast %188 : vector<1x128xf32> to vector<16x128xf32>
    %193 = arith.mulf %137, %192 : vector<16x128xf32>
    %194 = vector.broadcast %191 : vector<1x128xf32> to vector<16x128xf32>
    %195 = arith.addf %193, %194 : vector<16x128xf32>
    %c0_94 = arith.constant 0 : index
    %c0_95 = arith.constant 0 : index
    %c0_96 = arith.constant 0 : index
    %196 = vector.load %arg1[%c0_94, %c0_95, %c0_96] : memref<2x20x128xf32, #tpu.memory_space<vmem>>, vector<1x20x128xf32>
    %197 = vector.shape_cast %196 : vector<1x20x128xf32> to vector<20x128xf32>
    %198 = vector.extract_strided_slice %197 {offsets = [2, 0], sizes = [16, 128], strides = [1, 1]} : vector<20x128xf32> to vector<16x128xf32>
    %199 = arith.addf %195, %198 : vector<16x128xf32>
    %c0_97 = arith.constant 0 : index
    %c0_98 = arith.constant 0 : index
    %c0_99 = arith.constant 0 : index
    %200 = vector.load %arg9[%c0_97, %c0_98, %c0_99] : memref<2x16x128xf32, #tpu.memory_space<vmem>>, vector<1x16x128xf32>
    %201 = vector.shape_cast %200 : vector<1x16x128xf32> to vector<16x128xf32>
    %202 = vector.shape_cast %199 : vector<16x128xf32> to vector<1x16x128xf32>
    tpu.vector_store %arg9[%c0_97, %c0_98, %c0_99], %202 {strides = array<i32>} : memref<2x16x128xf32, #tpu.memory_space<vmem>>, vector<1x16x128xf32>,
    %203 = vector.broadcast %188 : vector<1x128xf32> to vector<16x128xf32>
    %204 = arith.mulf %168, %203 : vector<16x128xf32>
    %205 = vector.broadcast %191 : vector<1x128xf32> to vector<16x128xf32>
    %206 = arith.addf %204, %205 : vector<16x128xf32>
    %c1_100 = arith.constant 1 : index
    %c0_101 = arith.constant 0 : index
    %c0_102 = arith.constant 0 : index
    %207 = vector.load %arg1[%c1_100, %c0_101, %c0_102] : memref<2x20x128xf32, #tpu.memory_space<vmem>>, vector<1x20x128xf32>
    %208 = vector.shape_cast %207 : vector<1x20x128xf32> to vector<20x128xf32>
    %209 = vector.extract_strided_slice %208 {offsets = [2, 0], sizes = [16, 128], strides = [1, 1]} : vector<20x128xf32> to vector<16x128xf32>
    %210 = arith.addf %206, %209 : vector<16x128xf32>
    %c1_103 = arith.constant 1 : index
    %c0_104 = arith.constant 0 : index
    %c0_105 = arith.constant 0 : index
    %211 = vector.load %arg9[%c1_103, %c0_104, %c0_105] : memref<2x16x128xf32, #tpu.memory_space<vmem>>, vector<1x16x128xf32>
    %212 = vector.shape_cast %211 : vector<1x16x128xf32> to vector<16x128xf32>
    %213 = vector.shape_cast %210 : vector<16x128xf32> to vector<1x16x128xf32>
    tpu.vector_store %arg9[%c1_103, %c0_104, %c0_105], %213 {strides = array<i32>} : memref<2x16x128xf32, #tpu.memory_space<vmem>>, vector<1x16x128xf32>,
    return
  }
  func.func @transform_0(%arg0: i32) -> (i32, i32, i32) {
    %c0_i32 = arith.constant 0 : i32
    %c0_i32_0 = arith.constant 0 : i32
    %c0_i32_1 = arith.constant 0 : i32
    %c0_i32_2 = arith.constant 0 : i32
    return %c0_i32, %c0_i32_0, %c0_i32_1 : i32, i32, i32
  }
  func.func @transform_1(%arg0: i32) -> (i32, i32, i32) {
    %c0_i32 = arith.constant 0 : i32
    %c0_i32_0 = arith.constant 0 : i32
    %c0_i32_1 = arith.constant 0 : i32
    %c0_i32_2 = arith.constant 0 : i32
    return %c0_i32, %c0_i32_0, %c0_i32_1 : i32, i32, i32
  }
  func.func @transform_2(%arg0: i32) -> (i32, i32, i32) {
    %c0_i32 = arith.constant 0 : i32
    %c0_i32_0 = arith.constant 0 : i32
    %c0_i32_1 = arith.constant 0 : i32
    %c0_i32_2 = arith.constant 0 : i32
    return %c0_i32, %c0_i32_0, %c0_i32_1 : i32, i32, i32
  }
  func.func @transform_3(%arg0: i32) -> (i32, i32) {
    %c0_i32 = arith.constant 0 : i32
    %c0_i32_0 = arith.constant 0 : i32
    %c0_i32_1 = arith.constant 0 : i32
    return %c0_i32, %c0_i32_0 : i32, i32
  }
  func.func @transform_4(%arg0: i32) -> (i32, i32) {
    %c0_i32 = arith.constant 0 : i32
    %c0_i32_0 = arith.constant 0 : i32
    %c0_i32_1 = arith.constant 0 : i32
    return %c0_i32, %c0_i32_0 : i32, i32
  }
  func.func @transform_5(%arg0: i32) -> (i32, i32) {
    %c0_i32 = arith.constant 0 : i32
    %c0_i32_0 = arith.constant 0 : i32
    %c0_i32_1 = arith.constant 0 : i32
    return %c0_i32, %c0_i32_0 : i32, i32
  }
  func.func @transform_6(%arg0: i32) -> (i32, i32) {
    %c0_i32 = arith.constant 0 : i32
    %c0_i32_0 = arith.constant 0 : i32
    %c0_i32_1 = arith.constant 0 : i32
    return %c0_i32, %c0_i32_0 : i32, i32
  }
  func.func @transform_7(%arg0: i32) -> (i32, i32) {
    %c0_i32 = arith.constant 0 : i32
    %c0_i32_0 = arith.constant 0 : i32
    %c0_i32_1 = arith.constant 0 : i32
    return %c0_i32, %c0_i32_0 : i32, i32
  }
  func.func @transform_8(%arg0: i32) -> (i32, i32, i32) {
    %c0_i32 = arith.constant 0 : i32
    %c0_i32_0 = arith.constant 0 : i32
    %c0_i32_1 = arith.constant 0 : i32
    %c0_i32_2 = arith.constant 0 : i32
    return %c0_i32, %c0_i32_0, %c0_i32_1 : i32, i32, i32
  }
}

</mosaic_0001>

<bundles_post_ra>
// kernel: tpu_custom_call.1
= control target key start
LH: loop header
LB: loop body
LE: loop exit
PB: predicated region body
PF: predicated region fallthrough
CT: control target
= control target key end

     0   :  { %13 = vsyncpa [#allocation3], 0  ;;  %s4305_s0 = inlined_call_operand.vmem [shape: f32[2,20,128], index: 0, kind: input, shape index: {}]   ;;  %s4306_s1 = inlined_call_operand.hbm [shape: f32[3,128,128], index: 1, kind: input, shape index: {}]   ;;  %s4307_s2 = inlined_call_operand.hbm [shape: f32[3,128,128], index: 2, kind: input, shape index: {}]   ;;  %s4308_s3 = inlined_call_operand.vmem [shape: f32[1,128], index: 3, kind: input, shape index: {}]   ;;  %s4309_s4 = inlined_call_operand.vmem [shape: f32[1,128], index: 4, kind: input, shape index: {}]   ;;  %s4310_s5 = inlined_call_operand.vmem [shape: f32[1,128], index: 5, kind: input, shape index: {}]   ;;  %s4311_s6 = inlined_call_operand.vmem [shape: f32[1,128], index: 6, kind: input, shape index: {}]   ;;  %s4312_s7 = inlined_call_operand.vmem [shape: f32[1,128], index: 7, kind: input, shape index: {}]   ;;  %s4313_s8 = inlined_call_operand.hbm [shape: f32[2,16,128], index: 8, kind: output, shape index: {}]  }
   0x1   :  { %14 = vsyncpa [#allocation6], 0 }
   0x2   :  { %15 = vsyncpa [#allocation4], 0  ;;  %s3024_s27 = smov [#allocation2]  }
   0x3   :  { %s23_s28 = sshll.u32 %s3024_s27, 4  ;;  %s24_s28 = int_to_ptr.vmem [resolvable:$true] %s23_s28 }
   0x4   :  { %s2966_s29 = scalar_lea.vmem %s24_s28, 6144  ;;  %p2971_p1 = scmp.lt.s32.totalorder %s24_s28, %s24_s28 }
   0x5   :  { %p2967_p0 = scmp.ne.s32.totalorder %s24_s28, %s2966_s29  ;;  %p2972_p2 = scmp.lt.s32.totalorder %s2966_s29, %s2966_s29 }
   0x7   :  { %p2973_p3 = por %p2972_p2, %p2971_p1 }
   0x9   :  { %p2974_p4 = pnand %p2973_p3, %p2967_p0 }
   0xb   :  { %2977 = shalt.err (!%p2974_p4)
}
   0xc   :  { %s3025_s30 = smov 128   ;;  %s3026_s9 = smov 8  }
   0xd   :  { %29 = dma.hbm_to_vmem [thread:$0]  %s4306_s1, 6144, %s24_s28, [#allocation3], %s3025_s30, %s3025_s30, %s3026_s9  }
   0xe   :  { %s3027_s12 = smov [#allocation5]  }
   0xf   :  { %s35_s13 = sshll.u32 %s3027_s12, 4  ;;  %s36_s13 = int_to_ptr.vmem [resolvable:$true] %s35_s13 }
  0x10   :  { %s2986_s14 = scalar_lea.vmem %s36_s13, 6144  ;;  %p2991_p6 = scmp.lt.s32.totalorder %s36_s13, %s36_s13 }
  0x11   :  { %p2987_p5 = scmp.ne.s32.totalorder %s36_s13, %s2986_s14  ;;  %p2992_p7 = scmp.lt.s32.totalorder %s2986_s14, %s2986_s14 }
  0x13   :  { %p2993_p8 = por %p2992_p7, %p2991_p6 }
  0x15   :  { %p2994_p9 = pnand %p2993_p8, %p2987_p5 }
  0x17   :  { %2997 = shalt.err (!%p2994_p9)
}
  0x18   :  { %41 = dma.hbm_to_vmem [thread:$0]  %s4307_s2, 6144, %s36_s13, [#allocation6], %s3025_s30, %s3025_s30, %s3026_s9  }
  0x19   :  { %3018 = dma.done.wait [#allocation3], 6144  }
  0x1a   :  { %3019 = vsyncadd [#allocation3], 4294961152 }
  0x1b   :  { %3020 = dma.done.wait [#allocation6], 6144  }
  0x1c   :  { %3021 = vsyncadd [#allocation6], 4294961152  ;;  %v4326_v0 = vmov 0.0   ;;  %vm4314_vm0 = vmmov 0   ;;  %v3095_v1 = vld [vmem:[#allocation2 + $0xf8] sm:$0xff]  ;;  %v3099_v3 = vld [vmem:[#allocation2 + $0xf0] sm:$0xff] }
  0x1d   :  { %2350 = vmatprep.subr.mxu0 %v4326_v0  ;;  %2391 = vmatprep.subr.mxu1 %v4326_v0  ;;  %v3097_v2 = vld [vmem:[#allocation2 + $0x78] sm:$0xff]  ;;  %v3103_v4 = vld [vmem:[#allocation2 + $0x70] sm:$0xff]  ;;  %v3107_v5 = vld [vmem:[#allocation2 + $0xe8] sm:$0xff]  ;;  %vm4317_vm1 = vcmask 1046528   ;;  %vm4316_vm2 = vcmask 1045504  }
  0x1e   :  { %2382 = vmatprep.mubr.msk.f32.mxu0 %vm4314_vm0, %v4326_v0  ;;  %2423 = vmatprep.mubr.msk.f32.mxu1 %vm4314_vm0, %v4326_v0  ;;  %v3109_v6 = vld [vmem:[#allocation2 + $0x68] sm:$0xff]  ;;  %v3115_v7 = vld [vmem:[#allocation2 + $0xe0] sm:$0xff]  ;;  %v3123_v9 = vld [vmem:[#allocation2 + $0xd8] sm:$0xff] }
  0x1f   :  { %2351 = vmatpush3.msra.mxu0 %v3095_v1  ;;  %2392 = vmatpush3.msra.mxu1 %v3097_v2  ;;  %v3117_v8 = vld [vmem:[#allocation2 + $0x60] sm:$0xff]  ;;  %v3125_v10 = vld [vmem:[#allocation2 + $0x58] sm:$0xff]  ;;  %v3131_v11 = vld [vmem:[#allocation2 + $0xd0] sm:$0xff] }
  0x20   :  { %2352 = vmatprep.subr.mxu0 %v4326_v0  ;;  %2393 = vmatprep.subr.mxu1 %v4326_v0  ;;  %v3133_v12 = vld [vmem:[#allocation2 + $0x50] sm:$0xff]  ;;  %v3139_v13 = vld [vmem:[#allocation2 + $0xc8] sm:$0xff]  ;;  %v3147_v15 = vld [vmem:[#allocation2 + $0xc0] sm:$0xff] }
  0x21   :  { %2353 = vmatpush3.msra.mxu0 %v3099_v3  ;;  %2394 = vmatpush3.msra.mxu1 %v3103_v4  ;;  %v3141_v14 = vld [vmem:[#allocation2 + $0x48] sm:$0xff]  ;;  %v3149_v16 = vld [vmem:[#allocation2 + $0x40] sm:$0xff]  ;;  %v3155_v17 = vld [vmem:[#allocation2 + $0xb8] sm:$0xff] }
  0x22   :  { %2354 = vmatprep.subr.mxu0 %v4326_v0  ;;  %2395 = vmatprep.subr.mxu1 %v4326_v0  ;;  %v3157_v18 = vld [vmem:[#allocation2 + $0x38] sm:$0xff]  ;;  %v3163_v19 = vld [vmem:[#allocation2 + $0xb0] sm:$0xff]  ;;  %v3171_v21 = vld [vmem:[#allocation2 + $0xa8] sm:$0xff] }
  0x23   :  { %2355 = vmatpush3.msra.mxu0 %v3107_v5  ;;  %2396 = vmatpush3.msra.mxu1 %v3109_v6  ;;  %v3165_v20 = vld [vmem:[#allocation2 + $0x30] sm:$0xff]  ;;  %v3173_v22 = vld [vmem:[#allocation2 + $0x28] sm:$0xff]  ;;  %v3179_v23 = vld [vmem:[#allocation2 + $0xa0] sm:$0xff] }
  0x24   :  { %2356 = vmatprep.subr.mxu0 %v4326_v0  ;;  %2397 = vmatprep.subr.mxu1 %v4326_v0  ;;  %v3181_v24 = vld [vmem:[#allocation2 + $0x20] sm:$0xff]  ;;  %v3185_v25 = vld [vmem:[#allocation2 + $0x98] sm:$0xff]  ;;  %v3199_v28 = vld [vmem:[%s4305_s0 + $0x8] sm:$0xff] }
  0x25   :  { %2357 = vmatpush3.msra.mxu0 %v3115_v7  ;;  %2398 = vmatpush3.msra.mxu1 %v3117_v8  ;;  %v3189_v26 = vld [vmem:[#allocation2 + $0x18] sm:$0xff]  ;;  %v3194_v27 = vld [vmem:[%s4305_s0] sm:$0xff]  ;;  %v3205_v29 = vld [vmem:[#allocation2 + $0x90] sm:$0xff]  ;;  %v385_v32 = vrot.slane %v3199_v28, 1  ;;  %v571_v58 = vrot.slane %v3199_v28, 2 }
  0x26   :  { %2358 = vmatprep.subr.mxu0 %v4326_v0  ;;  %2399 = vmatprep.subr.mxu1 %v4326_v0  ;;  %v3207_v30 = vld [vmem:[#allocation2 + $0x10] sm:$0xff]  ;;  %v384_v31 = vrot.slane %v3194_v27, 1  ;;  %v3215_v33 = vld [vmem:[#allocation2 + $0x88] sm:$0xff]  ;;  %v3223_v35 = vld [vmem:[#allocation2 + $0x80] sm:$0xff]  ;;  %v570_v57 = vrot.slane %v3194_v27, 2 }
  0x27   :  { %2359 = vmatpush3.msra.mxu0 %v3123_v9  ;;  %2400 = vmatpush3.msra.mxu1 %v3125_v10  ;;  %v3217_v34 = vld [vmem:[#allocation2 + $0x8] sm:$0xff]  ;;  %v3225_v36 = vld [vmem:[#allocation2] sm:$0xff]  ;;  %v3236_v38 = vld [vmem:[#allocation2 + $0x178] sm:$0xff] }
  0x28   :  { %2360 = vmatprep.subr.mxu0 %v4326_v0  ;;  %2401 = vmatprep.subr.mxu1 %v4326_v0  ;;  %v386_v37 = vsel %vm4317_vm1, %v384_v31, %v385_v32  ;;  %v3241_v39 = vld [vmem:[#allocation2 + $0x170] sm:$0xff]  ;;  %v3247_v40 = vld [vmem:[#allocation2 + $0x168] sm:$0xff]  ;;  %v3253_v41 = vld [vmem:[#allocation2 + $0x160] sm:$0xff]  ;;  %v3363_v63 = vsel %vm4316_vm2, %v570_v57, %v571_v58 }
  0x29   :  { %2361 = vmatpush3.msra.mxu0 %v3131_v11  ;;  %2402 = vmatpush3.msra.mxu1 %v3133_v12  ;;  %v3259_v42 = vld [vmem:[#allocation2 + $0x158] sm:$0xff]  ;;  %v3265_v43 = vld [vmem:[#allocation2 + $0x150] sm:$0xff]  ;;  %v3271_v44 = vld [vmem:[#allocation2 + $0x148] sm:$0xff]  ;;  %4356 = vst [vmem:[#allocation11_spill] sm:$0xff] %v3363_v63 }
  0x2a   :  { %2362 = vmatprep.subr.mxu0 %v4326_v0  ;;  %2403 = vmatprep.subr.mxu1 %v4326_v0  ;;  %v3277_v45 = vld [vmem:[#allocation2 + $0x140] sm:$0xff]  ;;  %v3284_v46 = vld [vmem:[%s4305_s0 + $0x10] sm:$0xf]  ;;  %v3288_v47 = vld [vmem:[#allocation2 + $0x138] sm:$0xff] }
  0x2b   :  { %2363 = vmatpush3.msra.mxu0 %v3139_v13  ;;  %2404 = vmatpush3.msra.mxu1 %v3141_v14  ;;  %v3294_v48 = vld [vmem:[#allocation2 + $0x130] sm:$0xff]  ;;  %v387_v49 = vrot.slane %v3284_v46, 1  ;;  %v3301_v50 = vld [vmem:[#allocation2 + $0x128] sm:$0xff]  ;;  %v3312_v52 = vld [vmem:[#allocation2 + $0x120] sm:$0xff] }
  0x2c   :  { %2364 = vmatprep.subr.mxu0 %v4326_v0  ;;  %2405 = vmatprep.subr.mxu1 %v4326_v0  ;;  %v3320_v53 = vld [vmem:[#allocation2 + $0x118] sm:$0xff]  ;;  %v3329_v54 = vld [vmem:[#allocation2 + $0x110] sm:$0xff]  ;;  %v3342_v56 = vld [vmem:[%s4305_s0 + $0x20] sm:$0xff] }
  0x2d   :  { %2365 = vmatpush3.msra.mxu0 %v3147_v15  ;;  %2406 = vmatpush3.msra.mxu1 %v3149_v16  ;;  %v388_v51 = vsel %vm4317_vm1, %v385_v32, %v387_v49  ;;  %v3337_v55 = vld [vmem:[%s4305_s0 + $0x18] sm:$0xff]  ;;  %v3349_v59 = vld [vmem:[#allocation2 + $0x108] sm:$0xff]  ;;  %v696_v61 = vrot.slane %v3342_v56, 1  ;;  %v3358_v62 = vld [vmem:[#allocation2 + $0x100] sm:$0xff] }
  0x2e   :  { %2366 = vmatprep.subr.mxu0 %v4326_v0  ;;  %2407 = vmatprep.subr.mxu1 %v4326_v0  ;;  %v695_v60 = vrot.slane %v3337_v55, 1 }
  0x2f   :  { %2367 = vmatpush3.msra.mxu0 %v3155_v17  ;;  %2408 = vmatpush3.msra.mxu1 %v3157_v18 }
  0x30   :  { %2368 = vmatprep.subr.mxu0 %v4326_v0  ;;  %2409 = vmatprep.subr.mxu1 %v4326_v0 }
  0x31   :  { %2369 = vmatpush3.msra.mxu0 %v3163_v19  ;;  %2410 = vmatpush3.msra.mxu1 %v3165_v20 }
  0x32   :  { %2370 = vmatprep.subr.mxu0 %v4326_v0  ;;  %2411 = vmatprep.subr.mxu1 %v4326_v0 }
  0x33   :  { %2371 = vmatpush3.msra.mxu0 %v3171_v21  ;;  %2412 = vmatpush3.msra.mxu1 %v3173_v22 }
  0x34   :  { %2372 = vmatprep.subr.mxu0 %v4326_v0  ;;  %2413 = vmatprep.subr.mxu1 %v4326_v0 }
  0x35   :  { %2373 = vmatpush3.msra.mxu0 %v3179_v23  ;;  %2414 = vmatpush3.msra.mxu1 %v3181_v24 }
  0x36   :  { %2374 = vmatprep.subr.mxu0 %v4326_v0  ;;  %2415 = vmatprep.subr.mxu1 %v4326_v0 }
  0x37   :  { %2375 = vmatpush3.msra.mxu0 %v3185_v25  ;;  %2416 = vmatpush3.msra.mxu1 %v3189_v26 }
  0x38   :  { %2376 = vmatprep.subr.mxu0 %v4326_v0  ;;  %2417 = vmatprep.subr.mxu1 %v4326_v0 }
  0x39   :  { %2377 = vmatpush3.msra.mxu0 %v3205_v29  ;;  %2418 = vmatpush3.msra.mxu1 %v3207_v30 }
  0x3a   :  { %2378 = vmatprep.subr.mxu0 %v4326_v0  ;;  %2419 = vmatprep.subr.mxu1 %v4326_v0 }
  0x3b   :  { %2379 = vmatpush3.msra.mxu0 %v3215_v33  ;;  %2420 = vmatpush3.msra.mxu1 %v3217_v34 }
  0x3c   :  { %2380 = vmatprep.subr.mxu0 %v4326_v0  ;;  %2421 = vmatprep.subr.mxu1 %v4326_v0 }
  0x3d   :  { %2381 = vmatpush3.msra.mxu0 %v3223_v35  ;;  %2422 = vmatpush3.msra.mxu1 %v3225_v36 }
  0x3e   :  { %2383 = vmatmul.mubr.f32.vlgmr.msra.gmra.mxu0 %v386_v37  ;;  %2432 = vmatprep.subr.mxu0 %v4326_v0 }
  0x3f   :  { %2473 = vmatprep.subr.mxu1 %v4326_v0  ;;  %2424 = vmatmul.mubr.f32.vlgmr.msra.gmra.mxu1 %v3194_v27 }
  0x40   :  { %2433 = vmatpush3.msra.mxu0 %v3236_v38  ;;  %2474 = vmatpush3.msra.mxu1 %v3095_v1  ;;  %v697_v1 = vsel %vm4317_vm1, %v695_v60, %v696_v61 }
  0x41   :  { %2434 = vmatprep.subr.mxu0 %v4326_v0  ;;  %2475 = vmatprep.subr.mxu1 %v4326_v0 }
  0x42   :  { %2435 = vmatpush3.msra.mxu0 %v3241_v39  ;;  %2476 = vmatpush3.msra.mxu1 %v3099_v3  ;;  %v573_v3 = vrot.slane %v3284_v46, 2 }
  0x43   :  { %2436 = vmatprep.subr.mxu0 %v4326_v0  ;;  %2477 = vmatprep.subr.mxu1 %v4326_v0 }
  0x44   :  { %2437 = vmatpush3.msra.mxu0 %v3247_v40  ;;  %2478 = vmatpush3.msra.mxu1 %v3107_v5  ;;  %v3383_v5 = vsel %vm4316_vm2, %v571_v58, %v573_v3 }
  0x45   :  { %2438 = vmatprep.subr.mxu0 %v4326_v0  ;;  %2479 = vmatprep.subr.mxu1 %v4326_v0  ;;  %4357 = vst [vmem:[#allocation12_spill] sm:$0xff] %v3383_v5 }
  0x46   :  { %2439 = vmatpush3.msra.mxu0 %v3253_v41  ;;  %2480 = vmatpush3.msra.mxu1 %v3115_v7  ;;  %v863_v7 = vrot.slane %v3337_v55, 2 }
  0x47   :  { %2440 = vmatprep.subr.mxu0 %v4326_v0  ;;  %2481 = vmatprep.subr.mxu1 %v4326_v0 }
  0x48   :  { %2441 = vmatpush3.msra.mxu0 %v3259_v42  ;;  %2482 = vmatpush3.msra.mxu1 %v3123_v9 }
  0x49   :  { %2442 = vmatprep.subr.mxu0 %v4326_v0  ;;  %2483 = vmatprep.subr.mxu1 %v4326_v0 }
  0x4a   :  { %2443 = vmatpush3.msra.mxu0 %v3265_v43  ;;  %2484 = vmatpush3.msra.mxu1 %v3131_v11 }
  0x4b   :  { %2444 = vmatprep.subr.mxu0 %v4326_v0  ;;  %2485 = vmatprep.subr.mxu1 %v4326_v0 }
  0x4c   :  { %2445 = vmatpush3.msra.mxu0 %v3271_v44  ;;  %2486 = vmatpush3.msra.mxu1 %v3139_v13 }
  0x4d   :  { %2446 = vmatprep.subr.mxu0 %v4326_v0  ;;  %2487 = vmatprep.subr.mxu1 %v4326_v0 }
  0x4e   :  { %2447 = vmatpush3.msra.mxu0 %v3277_v45  ;;  %2488 = vmatpush3.msra.mxu1 %v3147_v15 }
  0x4f   :  { %2448 = vmatprep.subr.mxu0 %v4326_v0  ;;  %2489 = vmatprep.subr.mxu1 %v4326_v0 }
  0x50   :  { %2449 = vmatpush3.msra.mxu0 %v3288_v47  ;;  %2490 = vmatpush3.msra.mxu1 %v3155_v17 }
  0x51   :  { %2450 = vmatprep.subr.mxu0 %v4326_v0  ;;  %2491 = vmatprep.subr.mxu1 %v4326_v0 }
  0x52   :  { %2451 = vmatpush3.msra.mxu0 %v3294_v48  ;;  %2492 = vmatpush3.msra.mxu1 %v3163_v19 }
  0x53   :  { %2452 = vmatprep.subr.mxu0 %v4326_v0  ;;  %2493 = vmatprep.subr.mxu1 %v4326_v0 }
  0x54   :  { %2453 = vmatpush3.msra.mxu0 %v3301_v50  ;;  %2494 = vmatpush3.msra.mxu1 %v3171_v21 }
  0x55   :  { %2385 = vmatprep.mubr.msk.f32.mxu0 %vm4314_vm0, %v4326_v0  ;;  %2454 = vmatprep.subr.mxu0 %v4326_v0 }
  0x56   :  { %2495 = vmatprep.subr.mxu1 %v4326_v0  ;;  %2386 = vmatmul.mubr.f32.gmra.mxu0 %v388_v51 }
  0x57   :  { %2455 = vmatpush3.msra.mxu0 %v3312_v52  ;;  %2496 = vmatpush3.msra.mxu1 %v3179_v23 }
  0x58   :  { %2426 = vmatprep.mubr.msk.f32.mxu1 %vm4314_vm0, %v4326_v0  ;;  %2456 = vmatprep.subr.mxu0 %v4326_v0 }
  0x59   :  { %2497 = vmatprep.subr.mxu1 %v4326_v0  ;;  %2427 = vmatmul.mubr.f32.gmra.mxu1 %v3199_v28 }
  0x5a   :  { %2457 = vmatpush3.msra.mxu0 %v3320_v53  ;;  %2498 = vmatpush3.msra.mxu1 %v3185_v25 }
  0x5b   :  { %2388 = vmatprep.mubr.msk.f32.mxu0 %vm4314_vm0, %v4326_v0  ;;  %2458 = vmatprep.subr.mxu0 %v4326_v0 }
  0x5c   :  { %2499 = vmatprep.subr.mxu1 %v4326_v0  ;;  %2389 = vmatmul.mubr.f32.gmra.mxu0 %v387_v49 }
  0x5d   :  { %2459 = vmatpush3.msra.mxu0 %v3329_v54  ;;  %2500 = vmatpush3.msra.mxu1 %v3205_v29 }
  0x5e   :  { %2429 = vmatprep.mubr.msk.f32.mxu1 %vm4314_vm0, %v4326_v0  ;;  %2460 = vmatprep.subr.mxu0 %v4326_v0 }
  0x5f   :  { %2501 = vmatprep.subr.mxu1 %v4326_v0  ;;  %2430 = vmatmul.mubr.f32.gmra.mxu1 %v3284_v46 }
  0x60   :  { %2461 = vmatpush3.msra.mxu0 %v3349_v59  ;;  %2502 = vmatpush3.msra.mxu1 %v3215_v33 }
  0x61   :  { %2462 = vmatprep.subr.mxu0 %v4326_v0  ;;  %2503 = vmatprep.subr.mxu1 %v4326_v0 }
  0x62   :  { %2463 = vmatpush3.msra.mxu0 %v3358_v62  ;;  %2464 = vmatprep.mubr.msk.f32.mxu0 %vm4314_vm0, %v4326_v0 }
  0x63   :  { %2504 = vmatpush3.msra.mxu1 %v3223_v35  ;;  %2465 = vmatmul.mubr.f32.vlgmr.msra.gmra.mxu0 %v3363_v63 }
  0x64   :  { %2505 = vmatprep.mubr.msk.f32.mxu1 %vm4314_vm0, %v4326_v0  ;;  %2514 = vmatprep.subr.mxu0 %v4326_v0 }
  0x65   :  { %2555 = vmatprep.subr.mxu1 %v4326_v0  ;;  %2506 = vmatmul.mubr.f32.vlgmr.msra.gmra.mxu1 %v697_v1  ;;  %v4397_v1 = vmov 0 }
  0x66   :  { %2515 = vmatpush3.msra.mxu0 %v3097_v2  ;;  %2556 = vmatpush3.msra.mxu1 %v3236_v38  ;;  %v1991_v2 = vld [vmem:[%s4305_s0 + $0x28] sm:$0xf]  ;;  %v4370_v38 = vmov 0 }
  0x67   :  { %2516 = vmatprep.subr.mxu0 %v4326_v0  ;;  %2557 = vmatprep.subr.mxu1 %v4326_v0 }
  0x68   :  { %2467 = vmatprep.mubr.msk.f32.mxu0 %vm4314_vm0, %v4326_v0  ;;  %2517 = vmatpush3.msra.mxu0 %v3103_v4  ;;  %v698_v4 = vrot.slane %v1991_v2, 1 }
  0x69   :  { %2558 = vmatpush3.msra.mxu1 %v3241_v39  ;;  %2468 = vmatmul.mubr.f32.gmra.mxu0 %v3383_v5 }
  0x6a   :  { %2518 = vmatprep.subr.mxu0 %v4326_v0  ;;  %2559 = vmatprep.subr.mxu1 %v4326_v0 }
  0x6b   :  { %2519 = vmatpush3.msra.mxu0 %v3109_v6  ;;  %2560 = vmatpush3.msra.mxu1 %v3247_v40  ;;  %v699_v6 = vsel %vm4317_vm1, %v696_v61, %v698_v4 }
  0x6c   :  { %2520 = vmatprep.subr.mxu0 %v4326_v0  ;;  %2561 = vmatprep.subr.mxu1 %v4326_v0 }
  0x6d   :  { %2470 = vmatprep.mubr.msk.f32.mxu0 %vm4314_vm0, %v4326_v0  ;;  %2521 = vmatpush3.msra.mxu0 %v3117_v8  ;;  %v864_v8 = vrot.slane %v3342_v56, 2 }
  0x6e   :  { %2562 = vmatpush3.msra.mxu1 %v3253_v41  ;;  %2471 = vmatmul.mubr.f32.gmra.mxu0 %v573_v3  ;;  %v4373_v41 = vmov 0 }
  0x6f   :  { %2522 = vmatprep.subr.mxu0 %v4326_v0  ;;  %2563 = vmatprep.subr.mxu1 %v4326_v0  ;;  %v865_v9 = vsel %vm4316_vm2, %v863_v7, %v864_v8 }
  0x70   :  { %2523 = vmatpush3.msra.mxu0 %v3125_v10  ;;  %2564 = vmatpush3.msra.mxu1 %v3259_v42  ;;  %v866_v10 = vrot.slane %v1991_v2, 2 }
  0x71   :  { %2524 = vmatprep.subr.mxu0 %v4326_v0  ;;  %2565 = vmatprep.subr.mxu1 %v4326_v0 }
  0x72   :  { %2525 = vmatpush3.msra.mxu0 %v3133_v12  ;;  %2566 = vmatpush3.msra.mxu1 %v3265_v43  ;;  %v867_v11 = vsel %vm4316_vm2, %v864_v8, %v866_v10  ;;  %v58_v12 = vlaneseq }
  0x73   :  { %2526 = vmatprep.subr.mxu0 %v4326_v0  ;;  %2567 = vmatprep.subr.mxu1 %v4326_v0 }
  0x74   :  { %2527 = vmatpush3.msra.mxu0 %v3141_v14  ;;  %2568 = vmatpush3.msra.mxu1 %v3271_v44  ;;  %v3484_v13 = vshrl.u32 %v58_v12, 7  ;;  %v76_v15 = vand.u32 127, %v58_v12  ;;  %v4376_v44 = vmov 0 }
  0x75   :  { %2528 = vmatprep.subr.mxu0 %v4326_v0  ;;  %2569 = vmatprep.subr.mxu1 %v4326_v0 }
  0x76   :  { %2529 = vmatpush3.msra.mxu0 %v3149_v16  ;;  %2570 = vmatpush3.msra.mxu1 %v3277_v45  ;;  %v74_v14 = vadd.s32 120, %v3484_v13  ;;  %v3487_v17 = vand.u32 7, %v76_v15  ;;  %v72_v21 = vadd.s32 104, %v3484_v13  ;;  %v71_v25 = vadd.s32 96, %v3484_v13 }
  0x77   :  { %2530 = vmatprep.subr.mxu0 %v4326_v0  ;;  %2571 = vmatprep.subr.mxu1 %v4326_v0  ;;  %v70_v28 = vadd.s32 88, %v3484_v13  ;;  %v69_v31 = vadd.s32 80, %v3484_v13  ;;  %v67_v37 = vadd.s32 64, %v3484_v13  ;;  %v66_v40 = vadd.s32 56, %v3484_v13 }
  0x78   :  { %2531 = vmatpush3.msra.mxu0 %v3157_v18  ;;  %2572 = vmatpush3.msra.mxu1 %v3288_v47  ;;  %v186_v16 = vand.u32 7, %v74_v14  ;;  %v73_v18 = vadd.s32 112, %v3484_v13  ;;  %v165_v27 = vand.u32 7, %v71_v25  ;;  %v65_v43 = vadd.s32 48, %v3484_v13 }
  0x79   :  { %2532 = vmatprep.subr.mxu0 %v4326_v0  ;;  %2573 = vmatprep.subr.mxu1 %v4326_v0  ;;  %v151_v33 = vand.u32 7, %v69_v31  ;;  %v137_v39 = vand.u32 7, %v67_v37  ;;  %v130_v42 = vand.u32 7, %v66_v40  ;;  %v64_v46 = vadd.s32 40, %v3484_v13 }
  0x7a   :  { %2533 = vmatpush3.msra.mxu0 %v3165_v20  ;;  %2574 = vmatpush3.msra.mxu1 %v3294_v48  ;;  %vm3491_vm3 = vcmp.eq.s32.totalorder %v186_v16, %v3487_v17  ;;  %v179_v20 = vand.u32 7, %v73_v18  ;;  %vm3532_vm6 = vcmp.eq.s32.totalorder %v165_v27, %v3487_v17  ;;  %v123_v45 = vand.u32 7, %v65_v43 }
  0x7b   :  { %2534 = vmatprep.subr.mxu0 %v4326_v0  ;;  %2575 = vmatprep.subr.mxu1 %v4326_v0  ;;  %vm3560_vm8 = vcmp.eq.s32.totalorder %v151_v33, %v3487_v17  ;;  %vm3588_vm10 = vcmp.eq.s32.totalorder %v137_v39, %v3487_v17  ;;  %vm3602_vm11 = vcmp.eq.s32.totalorder %v130_v42, %v3487_v17  ;;  %v4379_v47 = vmov 0 }
  0x7c   :  { %2535 = vmatpush3.msra.mxu0 %v3173_v22  ;;  %2576 = vmatpush3.msra.mxu1 %v3301_v50  ;;  %v4324_v22 = vmov 1.0   ;;  %vm3504_vm4 = vcmp.eq.s32.totalorder %v179_v20, %v3487_v17  ;;  %v4374_v41 = vsel %vm3588_vm10, 4294967295, %v4373_v41  ;;  %v4377_v44 = vsel %vm3602_vm11, 4294967295, %v4376_v44 }
  0x7d   :  { %2536 = vmatprep.subr.mxu0 %v4326_v0  ;;  %2577 = vmatprep.subr.mxu1 %v4326_v0  ;;  %4375 = vst [vmem:[#allocation14_spill] sm:$0xff] %v4374_v41  ;;  %4378 = vst [vmem:[#allocation15_spill] sm:$0xff] %v4377_v44  ;;  %vm3616_vm12 = vcmp.eq.s32.totalorder %v123_v45, %v3487_v17  ;;  %v116_v48 = vand.u32 7, %v64_v46  ;;  %v63_v49 = vadd.s32 32, %v3484_v13  ;;  %v4382_v50 = vmov 0 }
  0x7e   :  { %2508 = vmatprep.mubr.msk.f32.mxu1 %vm4314_vm0, %v4326_v0  ;;  %2537 = vmatpush3.msra.mxu0 %v3181_v24  ;;  %v172_v24 = vand.u32 7, %v72_v21  ;;  %v4380_v47 = vsel %vm3616_vm12, 4294967295, %v4379_v47  ;;  %v60_v58 = vadd.s32 8, %v3484_v13  ;;  %v81_v61 = vand.u32 7, %v3484_v13 }
  0x7f   :  { %2578 = vmatpush3.msra.mxu1 %v3312_v52  ;;  %2538 = vmatprep.subr.mxu0 %v4326_v0  ;;  %4381 = vst [vmem:[#allocation16_spill] sm:$0xff] %v4380_v47  ;;  %vm3630_vm13 = vcmp.eq.s32.totalorder %v116_v48, %v3487_v17  ;;  %v109_v51 = vand.u32 7, %v63_v49  ;;  %v62_v52 = vadd.s32 24, %v3484_v13 }
  0x80   :  { %2509 = vmatmul.mubr.f32.gmra.mxu1 %v699_v6  ;;  %2579 = vmatprep.subr.mxu1 %v4326_v0  ;;  %vm3518_vm5 = vcmp.eq.s32.totalorder %v172_v24, %v3487_v17  ;;  %v4383_v50 = vsel %vm3630_vm13, 4294967295, %v4382_v50  ;;  %v88_v60 = vand.u32 7, %v60_v58  ;;  %vm3692_vm1 = vcmp.eq.s32.totalorder %v81_v61, %v3487_v17 }
  0x81   :  { %2539 = vmatpush3.msra.mxu0 %v3189_v26  ;;  %2580 = vmatpush3.msra.mxu1 %v3320_v53  ;;  %4384 = vst [vmem:[#allocation17_spill] sm:$0xff] %v4383_v50  ;;  %v61_v53 = vadd.s32 16, %v3484_v13  ;;  %vm3645_vm14 = vcmp.eq.s32.totalorder %v109_v51, %v3487_v17  ;;  %v4398_v1 = vsel %vm3692_vm1, 4294967295, %v4397_v1 }
  0x82   :  { %2540 = vmatprep.subr.mxu0 %v4326_v0  ;;  %2581 = vmatprep.subr.mxu1 %v4326_v0  ;;  %vm3686_vm2 = vcmp.eq.s32.totalorder %v88_v60, %v3487_v17  ;;  %4399 = vst [vmem:[#allocation22_spill] sm:$0xff] %v4398_v1 }
  0x83   :  { %2511 = vmatprep.mubr.msk.f32.mxu1 %vm4314_vm0, %v4326_v0  ;;  %2541 = vmatpush3.msra.mxu0 %v3207_v30  ;;  %v158_v30 = vand.u32 7, %v70_v28  ;;  %v95_v57 = vand.u32 7, %v61_v53 }
  0x84   :  { %2582 = vmatpush3.msra.mxu1 %v3329_v54  ;;  %2542 = vmatprep.subr.mxu0 %v4326_v0  ;;  %v4385_v54 = vmov 0 }
  0x85   :  { %2512 = vmatmul.mubr.f32.gmra.mxu1 %v698_v4  ;;  %2583 = vmatprep.subr.mxu1 %v4326_v0  ;;  %vm3546_vm7 = vcmp.eq.s32.totalorder %v158_v30, %v3487_v17  ;;  %v4386_v54 = vsel %vm3645_vm14, 4294967295, %v4385_v54 }
  0x86   :  { %2543 = vmatpush3.msra.mxu0 %v3217_v34  ;;  %2584 = vmatpush3.msra.mxu1 %v3349_v59  ;;  %v68_v34 = vadd.s32 72, %v3484_v13  ;;  %4387 = vst [vmem:[#allocation18_spill] sm:$0xff] %v4386_v54  ;;  %v4391_v59 = vmov 0  ;;  %v3891_v54 = vsub.s32 0, %v3484_v13 }
  0x87   :  { %2544 = vmatprep.subr.mxu0 %v4326_v0  ;;  %2585 = vmatprep.subr.mxu1 %v4326_v0 }
  0x88   :  { %2545 = vmatpush3.msra.mxu0 %v3225_v36  ;;  %2546 = vmatprep.mubr.msk.f32.mxu0 %vm4314_vm0, %v4326_v0  ;;  %v144_v36 = vand.u32 7, %v68_v34  ;;  %4400 = vst [vmem:[#allocation23_spill] sm:$0xff] %v3891_v54 }
  0x89   :  { %2586 = vmatpush3.msra.mxu1 %v3358_v62  ;;  %2587 = vmatprep.mubr.msk.f32.mxu1 %vm4314_vm0, %v4326_v0  ;;  %v4394_v62 = vmov 0 }
  0x8a   :  { %2547 = vmatmul.mubr.f32.vlgmr.msra.gmra.mxu0 %v3337_v55  ;;  %2588 = vmatmul.mubr.f32.vlgmr.msra.gmra.mxu1 %v865_v9  ;;  %vm3574_vm9 = vcmp.eq.s32.totalorder %v144_v36, %v3487_v17  ;;  %v102_v55 = vand.u32 7, %v62_v52  ;;  %v4395_v62 = vsel %vm3686_vm2, 4294967295, %v4394_v62 }
  0x8b   :  { %2549 = vmatprep.mubr.msk.f32.mxu0 %vm4314_vm0, %v4326_v0  ;;  %2590 = vmatprep.mubr.msk.f32.mxu1 %vm4314_vm0, %v4326_v0  ;;  %v4371_v38 = vsel %vm3574_vm9, 4294967295, %v4370_v38  ;;  %4396 = vst [vmem:[#allocation21_spill] sm:$0xff] %v4395_v62 }
  0x8c   :  { %2596 = vmatprep.subr.mxu0 %v4326_v0  ;;  %2631 = vmatprep.subr.mxu1 %v4326_v0  ;;  %4372 = vst [vmem:[#allocation13_spill] sm:$0xff] %v4371_v38  ;;  %vm3658_vm15 = vcmp.eq.s32.totalorder %v102_v55, %v3487_v17 }
  0x8d   :  { %2597 = vmatpush3.msk.msra.mxu0 %vm3491_vm3, %v4324_v22  ;;  %2632 = vmatpush3.msk.msra.mxu1 %vm3491_vm3, %v4324_v22  ;;  %v4416_v35 = vld [vmem:[#allocation18_spill] sm:$0xff] }
  0x8e   :  { %2550 = vmatmul.mubr.f32.gmra.mxu0 %v3342_v56  ;;  %2591 = vmatmul.mubr.f32.gmra.mxu1 %v867_v11  ;;  %v4388_v56 = vmov 0 }
  0x8f   :  { %2552 = vmatprep.mubr.msk.f32.mxu0 %vm4314_vm0, %v4326_v0  ;;  %2593 = vmatprep.mubr.msk.f32.mxu1 %vm4314_vm0, %v4326_v0  ;;  %v4389_v56 = vsel %vm3658_vm15, 4294967295, %v4388_v56 }
  0x90   :  { %2598 = vmatprep.subr.mxu0 %v4326_v0  ;;  %2633 = vmatprep.subr.mxu1 %v4326_v0  ;;  %4390 = vst [vmem:[#allocation19_spill] sm:$0xff] %v4389_v56  ;;  %v1124_v56 = vld [vmem:[%s4308_s3] sm:$0x1] }
  0x91   :  { %2599 = vmatpush3.msk.msra.mxu0 %vm3504_vm4, %v4324_v22  ;;  %2634 = vmatpush3.msk.msra.mxu1 %vm3504_vm4, %v4324_v22 }
  0x92   :  { %2553 = vmatmul.mubr.f32.gmra.mxu0 %v1991_v2  ;;  %2594 = vmatmul.mubr.f32.gmra.mxu1 %v866_v10 }
  0x93   :  { %2628 = vmatprep.mubr.msk.f32.mxu0 %vm4314_vm0, %v4326_v0  ;;  %2663 = vmatprep.mubr.msk.f32.mxu1 %vm4314_vm0, %v4326_v0  ;;  %vm3672_vm0 = vcmp.eq.s32.totalorder %v95_v57, %v3487_v17 }
  0x94   :  { %2600 = vmatprep.subr.mxu0 %v4326_v0  ;;  %2635 = vmatprep.subr.mxu1 %v4326_v0  ;;  %v4392_v59 = vsel %vm3672_vm0, 4294967295, %v4391_v59 }
  0x95   :  { %2601 = vmatpush3.msk.msra.mxu0 %vm3518_vm5, %v4324_v22  ;;  %2636 = vmatpush3.msk.msra.mxu1 %vm3518_vm5, %v4324_v22  ;;  %4393 = vst [vmem:[#allocation20_spill] sm:$0xff] %v4392_v59 }
  0x96   :  { %2602 = vmatprep.subr.mxu0 %v4326_v0  ;;  %2637 = vmatprep.subr.mxu1 %v4326_v0 }
  0x97   :  { %2603 = vmatpush3.msk.msra.mxu0 %vm3532_vm6, %v4324_v22  ;;  %2638 = vmatpush3.msk.msra.mxu1 %vm3532_vm6, %v4324_v22 }
  0x98   :  { %2604 = vmatprep.subr.mxu0 %v4326_v0  ;;  %2639 = vmatprep.subr.mxu1 %v4326_v0 }
  0x99   :  { %2605 = vmatpush3.msk.msra.mxu0 %vm3546_vm7, %v4324_v22  ;;  %2640 = vmatpush3.msk.msra.mxu1 %vm3546_vm7, %v4324_v22 }
  0x9a   :  { %2606 = vmatprep.subr.mxu0 %v4326_v0  ;;  %2641 = vmatprep.subr.mxu1 %v4326_v0 }
  0x9b   :  { %2607 = vmatpush3.msk.msra.mxu0 %vm3560_vm8, %v4324_v22  ;;  %2642 = vmatpush3.msk.msra.mxu1 %vm3560_vm8, %v4324_v22 }
  0x9c   :  { %2608 = vmatprep.subr.mxu0 %v4326_v0  ;;  %2643 = vmatprep.subr.mxu1 %v4326_v0 }
  0x9d   :  { %2609 = vmatpush3.msk.msra.mxu0 %vm3574_vm9, %v4324_v22  ;;  %2644 = vmatpush3.msk.msra.mxu1 %vm3574_vm9, %v4324_v22 }
  0x9e   :  { %2610 = vmatprep.subr.mxu0 %v4326_v0  ;;  %2645 = vmatprep.subr.mxu1 %v4326_v0 }
  0x9f   :  { %2611 = vmatpush3.msk.msra.mxu0 %vm3588_vm10, %v4324_v22  ;;  %2646 = vmatpush3.msk.msra.mxu1 %vm3588_vm10, %v4324_v22 }
  0xa0   :  { %2612 = vmatprep.subr.mxu0 %v4326_v0  ;;  %2647 = vmatprep.subr.mxu1 %v4326_v0 }
  0xa1   :  { %2613 = vmatpush3.msk.msra.mxu0 %vm3602_vm11, %v4324_v22  ;;  %2648 = vmatpush3.msk.msra.mxu1 %vm3602_vm11, %v4324_v22 }
  0xa2   :  { %2614 = vmatprep.subr.mxu0 %v4326_v0  ;;  %2649 = vmatprep.subr.mxu1 %v4326_v0 }
  0xa3   :  { %2615 = vmatpush3.msk.msra.mxu0 %vm3616_vm12, %v4324_v22  ;;  %2650 = vmatpush3.msk.msra.mxu1 %vm3616_vm12, %v4324_v22 }
  0xa4   :  { %2616 = vmatprep.subr.mxu0 %v4326_v0  ;;  %2651 = vmatprep.subr.mxu1 %v4326_v0 }
  0xa5   :  { %2617 = vmatpush3.msk.msra.mxu0 %vm3630_vm13, %v4324_v22  ;;  %2652 = vmatpush3.msk.msra.mxu1 %vm3630_vm13, %v4324_v22 }
  0xa6   :  { %2618 = vmatprep.subr.mxu0 %v4326_v0  ;;  %2653 = vmatprep.subr.mxu1 %v4326_v0 }
  0xa7   :  { %2619 = vmatpush3.msk.msra.mxu0 %vm3645_vm14, %v4324_v22  ;;  %2654 = vmatpush3.msk.msra.mxu1 %vm3645_vm14, %v4324_v22 }
  0xa8   :  { %2620 = vmatprep.subr.mxu0 %v4326_v0  ;;  %2655 = vmatprep.subr.mxu1 %v4326_v0 }
  0xa9   :  { %2621 = vmatpush3.msk.msra.mxu0 %vm3658_vm15, %v4324_v22  ;;  %2656 = vmatpush3.msk.msra.mxu1 %vm3658_vm15, %v4324_v22 }
  0xaa   :  { %2622 = vmatprep.subr.mxu0 %v4326_v0  ;;  %2657 = vmatprep.subr.mxu1 %v4326_v0 }
  0xab   :  { %2623 = vmatpush3.msk.msra.mxu0 %vm3672_vm0, %v4324_v22  ;;  %2658 = vmatpush3.msk.msra.mxu1 %vm3672_vm0, %v4324_v22  ;;  %vm665_vm0 = vcmask 1041408  }
  0xac   :  { %2624 = vmatprep.subr.mxu0 %v4326_v0  ;;  %2659 = vmatprep.subr.mxu1 %v4326_v0 }
  0xad   :  { %2625 = vmatpush3.msk.msra.mxu0 %vm3686_vm2, %v4324_v22  ;;  %2660 = vmatpush3.msk.msra.mxu1 %vm3686_vm2, %v4324_v22  ;;  %vm329_vm2 = vcmp.ge.s32.totalorder %v3484_v13, 1 }
  0xae   :  { %2626 = vmatprep.subr.mxu0 %v4326_v0  ;;  %2661 = vmatprep.subr.mxu1 %v4326_v0  ;;  %v3715_v40 = vsel %vm329_vm2, 1.0, %v4326_v0 }
  0xaf   :  { %2627 = vmatpush3.msk.msra.mxu0 %vm3692_vm1, %v4324_v22  ;;  %2662 = vmatpush3.msk.msra.mxu1 %vm3692_vm1, %v4324_v22  ;;  %vm334_vm1 = vcmp.le.s32.totalorder %v61_v53, 16 }
  0xb0   :  { %v3712_v34 = vsel %vm334_vm1, 1.0, %v4326_v0 }
  0xfe   :  { %v458_v3 = vpop.f32.mrf.mxu0 }
  0xff   :  { %v538_v2 = vpop.f32.mrf.mxu1 }
 0x100   :  { %v539_v4 = vadd.f32 %v538_v2, %v458_v3  ;;  %v2384_v6 = vpop.f32.mrf.mxu0 }
 0x101   :  { %v2425_v7 = vpop.f32.mrf.mxu1 }
 0x116   :  { %v463_v8 = vpop.f32.mrf.mxu0 }
 0x118   :  { %v2387_v9 = vpop.f32.mrf.mxu0 }
 0x119   :  { %v543_v10 = vpop.f32.mrf.mxu1 }
 0x11a   :  { %v544_v37 = vadd.f32 %v543_v10, %v463_v8 }
 0x11b   :  { %v2428_v11 = vpop.f32.mrf.mxu1 }
 0x11c   :  { %v468_v12 = vpop.f32.mrf.mxu0 }
 0x11e   :  { %v2390_v14 = vpop.f32.mrf.mxu0 }
 0x11f   :  { %v548_v15 = vpop.f32.mrf.mxu1 }
 0x120   :  { %v549_v30 = vadd.f32 %v548_v15, %v468_v12 }
 0x121   :  { %v2431_v16 = vpop.f32.mrf.mxu1 }
 0x123   :  { %v644_v17 = vpop.f32.mrf.mxu0 }
 0x124   :  { %v658_v39 = vadd.f32 %v644_v17, %v539_v4 }
 0x125   :  { %v769_v18 = vpop.f32.mrf.mxu1  ;;  %v2466_v20 = vpop.f32.mrf.mxu0 }
 0x126   :  { %v3723_v48 = vmul.f32 %v3715_v40, %v658_v39 }
 0x127   :  { %v2507_v21 = vpop.f32.mrf.mxu1 }
 0x128   :  { %v675_v57 = vmul.f32 %v3723_v48, %v3723_v48 }
 0x129   :  { %v649_v24 = vpop.f32.mrf.mxu0 }
 0x12a   :  { %v3720_v45 = vadd.f32 %v649_v24, %v544_v37 }
 0x12b   :  { %v2469_v25 = vpop.f32.mrf.mxu0 }
 0x12c   :  { %v676_v51 = vmul.f32 %v3720_v45, %v3720_v45  ;;  %v664_v58 = vadd.f32 %v3723_v48, %v3720_v45 }
 0x12e   :  { %v654_v27 = vpop.f32.mrf.mxu0  ;;  %v678_v4 = vadd.f32 %v676_v51, %v675_v57 }
 0x12f   :  { %v660_v33 = vadd.f32 %v654_v27, %v549_v30 }
 0x130   :  { %v2472_v28 = vpop.f32.mrf.mxu0 }
 0x131   :  { %v3718_v42 = vmul.f32 %v3712_v34, %v660_v33 }
 0x133   :  { %v677_v49 = vmul.f32 %v3718_v42, %v3718_v42  ;;  %v666_v55 = vsel %vm665_vm0, %v3718_v42, 0.0 }
 0x134   :  { %v667_v6 = vadd.f32 %v666_v55, %v664_v58 }
 0x135   :  { %v679_v2 = vsel %vm665_vm0, %v677_v49, 0.0 }
 0x136   :  { %v680_v10 = vadd.f32 %v679_v2, %v678_v4  ;;  %v668_v15 = vrot.slane %v667_v6, 4 }
 0x138   :  { %v669_v30 = vadd.f32 %v668_v15, %v667_v6 }
 0x13a   :  { %v670_v49 = vrot.slane %v669_v30, 2 }
 0x140   :  { %v774_v31 = vpop.f32.mrf.mxu1 }
 0x142   :  { %v2510_v36 = vpop.f32.mrf.mxu1 }
 0x145   :  { %v779_v43 = vpop.f32.mrf.mxu1 }
 0x147   :  { %v2513_v46 = vpop.f32.mrf.mxu1 }
 0x14a   :  { %v849_v52 = vpop.f32.mrf.mxu0  ;;  %v937_v53 = vpop.f32.mrf.mxu1 }
 0x14b   :  { %v850_v60 = vadd.f32 %v849_v52, %v769_v18  ;;  %v681_v18 = vrot.slane %v680_v10, 4 }
 0x14c   :  { %v2548_v61 = vpop.f32.mrf.mxu0  ;;  %v2589_v3 = vpop.f32.mrf.mxu1 }
 0x14d   :  { %v951_v11 = vadd.f32 %v937_v53, %v850_v60  ;;  %v682_v36 = vadd.f32 %v681_v18, %v680_v10  ;;  %v671_v60 = vadd.f32 %v670_v49, %v669_v30  ;;  %v3762_v30 = vld [vmem:[#allocation5 + $0xf8] sm:$0xff]  ;;  %v3790_v49 = vld [vmem:[#allocation5 + $0x50] sm:$0xff] }
 0x14e   :  { %v854_v7 = vpop.f32.mrf.mxu0  ;;  %v942_v8 = vpop.f32.mrf.mxu1  ;;  %2666 = vmatprep.subr.mxu0 %v3762_v30 }
 0x14f   :  { %v855_v9 = vadd.f32 %v854_v7, %v774_v31  ;;  %v3739_v24 = vmul.f32 %v3715_v40, %v951_v11  ;;  %v683_v55 = vrot.slane %v682_v36, 2  ;;  %v672_v7 = vrot.slane %v671_v60, 1 }
 0x150   :  { %v2551_v12 = vpop.f32.mrf.mxu0  ;;  %v2592_v14 = vpop.f32.mrf.mxu1 }
 0x151   :  { %v3736_v16 = vadd.f32 %v942_v8, %v855_v9  ;;  %v967_v37 = vmul.f32 %v3739_v24, %v3739_v24  ;;  %v684_v2 = vadd.f32 %v683_v55, %v682_v36  ;;  %v673_v14 = vadd.f32 %v672_v7, %v671_v60  ;;  %v3770_v36 = vld [vmem:[#allocation5 + $0xf0] sm:$0xff]  ;;  %v3806_v55 = vld [vmem:[#allocation5 + $0x40] sm:$0xff]  ;;  %v3842_v7 = vld [vmem:[#allocation5 + $0xa8] sm:$0xff] }
 0x152   :  { %v859_v17 = vpop.f32.mrf.mxu0  ;;  %v947_v20 = vpop.f32.mrf.mxu1  ;;  %v3818_v60 = vld [vmem:[#allocation5 + $0xc0] sm:$0xff] }
 0x153   :  { %v860_v21 = vadd.f32 %v859_v17, %v779_v43  ;;  %v968_v31 = vmul.f32 %v3736_v16, %v3736_v16  ;;  %v957_v39 = vadd.f32 %v3739_v24, %v3736_v16  ;;  %v685_v12 = vrot.slane %v684_v2, 1 }
 0x154   :  { %v2554_v25 = vpop.f32.mrf.mxu0  ;;  %v2595_v27 = vpop.f32.mrf.mxu1 }
 0x155   :  { %v953_v28 = vadd.f32 %v947_v20, %v860_v21  ;;  %v970_v51 = vadd.f32 %v968_v31, %v967_v37  ;;  %v686_v21 = vadd.f32 %v685_v12, %v684_v2  ;;  %v3755_v27 = vld [vmem:[#allocation5 + $0x78] sm:$0xff]  ;;  %v3766_v31 = vld [vmem:[#allocation5 + $0x68] sm:$0xff]  ;;  %v3774_v37 = vld [vmem:[#allocation5 + $0x60] sm:$0xff] }
 0x156   :  { %2701 = vmatprep.subr.mxu1 %v3755_v27  ;;  %v3830_v2 = vld [vmem:[#allocation5 + $0x28] sm:$0xff] }
 0x157   :  { %v3744_v33 = vmul.f32 %v3712_v34, %v953_v28  ;;  %v3759_v28 = vld [vmem:[#allocation5 + $0x70] sm:$0xff]  ;;  %v3858_v12 = vld [vmem:[#allocation5 + $0x8] sm:$0xff] }
 0x159   :  { %v958_v43 = vsel %vm665_vm0, %v3744_v33, 0.0  ;;  %v969_v46 = vmul.f32 %v3744_v33, %v3744_v33 }
 0x15a   :  { %v959_v52 = vadd.f32 %v958_v43, %v957_v39  ;;  %v3778_v39 = vld [vmem:[#allocation5 + $0xe8] sm:$0xff]  ;;  %v3782_v43 = vld [vmem:[#allocation5 + $0x58] sm:$0xff] }
 0x15b   :  { %v971_v53 = vsel %vm665_vm0, %v969_v46, 0.0  ;;  %v3786_v46 = vld [vmem:[#allocation5 + $0xe0] sm:$0xff] }
 0x15c   :  { %v960_v57 = vrot.slane %v959_v52, 4  ;;  %v972_v58 = vadd.f32 %v971_v53, %v970_v51  ;;  %v3794_v51 = vld [vmem:[#allocation5 + $0xd8] sm:$0xff]  ;;  %v3802_v53 = vld [vmem:[#allocation5 + $0xd0] sm:$0xff] }
 0x15e   :  { %v961_v61 = vadd.f32 %v960_v57, %v959_v52  ;;  %v973_v3 = vrot.slane %v972_v58, 4  ;;  %v3798_v52 = vld [vmem:[#allocation5 + $0x48] sm:$0xff] }
 0x15f   :  { %v3810_v57 = vld [vmem:[#allocation5 + $0xc8] sm:$0xff] }
 0x160   :  { %v962_v4 = vrot.slane %v961_v61, 2  ;;  %v974_v6 = vadd.f32 %v973_v3, %v972_v58  ;;  %v3814_v58 = vld [vmem:[#allocation5 + $0x38] sm:$0xff] }
 0x161   :  { %v3826_v3 = vld [vmem:[#allocation5 + $0xb8] sm:$0xff] }
 0x162   :  { %v963_v8 = vadd.f32 %v962_v4, %v961_v61  ;;  %v975_v9 = vrot.slane %v974_v6, 2  ;;  %v3822_v61 = vld [vmem:[#allocation5 + $0x30] sm:$0xff] }
 0x163   :  { %v3834_v4 = vld [vmem:[#allocation5 + $0xb0] sm:$0xff] }
 0x164   :  { %v964_v10 = vrot.slane %v963_v8, 1  ;;  %v976_v11 = vadd.f32 %v975_v9, %v974_v6  ;;  %v3838_v6 = vld [vmem:[#allocation5 + $0x20] sm:$0xff] }
 0x165   :  { %v3848_v9 = vld [vmem:[#allocation5 + $0xa0] sm:$0xff] }
 0x166   :  { %v965_v15 = vadd.f32 %v964_v10, %v963_v8  ;;  %v977_v17 = vrot.slane %v976_v11, 1  ;;  %v3846_v8 = vld [vmem:[#allocation5 + $0x18] sm:$0xff]  ;;  %v3850_v10 = vld [vmem:[#allocation5 + $0x10] sm:$0xff] }
 0x168   :  { %v966_v20 = vadd.f32 %v965_v15, %v673_v14  ;;  %v978_v18 = vadd.f32 %v977_v17, %v976_v11  ;;  %v3854_v11 = vld [vmem:[#allocation5 + $0x98] sm:$0xff]  ;;  %v3862_v14 = vld [vmem:[#allocation5 + $0x90] sm:$0xff]  ;;  %v3866_v15 = vld [vmem:[#allocation5] sm:$0xff] }
 0x169   :  { %v3870_v17 = vld [vmem:[#allocation5 + $0x88] sm:$0xff] }
 0x16a   :  { %2629 = vmatmul.mubr.f32.vlgmr.msra.gmra.mxu0 %v966_v20  ;;  %v979_v25 = vadd.f32 %v978_v18, %v686_v21  ;;  %v3880_v20 = vld [vmem:[#allocation5 + $0x80] sm:$0xff]  ;;  %v3884_v21 = vld [vmem:[#allocation5 + $0x178] sm:$0xff] }
 0x16b   :  { %2667 = vmatpush3.msra.mxu0 %v3762_v30 }
 0x16c   :  { %2664 = vmatmul.mubr.f32.vlgmr.msra.gmra.mxu1 %v979_v25  ;;  %2668 = vmatprep.subr.mxu0 %v3770_v36 }
 0x16d   :  { %2702 = vmatpush3.msra.mxu1 %v3755_v27  ;;  %2669 = vmatpush3.msra.mxu0 %v3770_v36 }
 0x16e   :  { %2703 = vmatprep.subr.mxu1 %v3759_v28  ;;  %2670 = vmatprep.subr.mxu0 %v3778_v39 }
 0x16f   :  { %2704 = vmatpush3.msra.mxu1 %v3759_v28  ;;  %2671 = vmatpush3.msra.mxu0 %v3778_v39 }
 0x170   :  { %2705 = vmatprep.subr.mxu1 %v3766_v31  ;;  %2672 = vmatprep.subr.mxu0 %v3786_v46 }
 0x171   :  { %2706 = vmatpush3.msra.mxu1 %v3766_v31  ;;  %2673 = vmatpush3.msra.mxu0 %v3786_v46 }
 0x172   :  { %2707 = vmatprep.subr.mxu1 %v3774_v37  ;;  %2674 = vmatprep.subr.mxu0 %v3794_v51 }
 0x173   :  { %2708 = vmatpush3.msra.mxu1 %v3774_v37  ;;  %2675 = vmatpush3.msra.mxu0 %v3794_v51 }
 0x174   :  { %2709 = vmatprep.subr.mxu1 %v3782_v43  ;;  %2676 = vmatprep.subr.mxu0 %v3802_v53 }
 0x175   :  { %2710 = vmatpush3.msra.mxu1 %v3782_v43  ;;  %2677 = vmatpush3.msra.mxu0 %v3802_v53 }
 0x176   :  { %2711 = vmatprep.subr.mxu1 %v3790_v49  ;;  %2678 = vmatprep.subr.mxu0 %v3810_v57 }
 0x177   :  { %2712 = vmatpush3.msra.mxu1 %v3790_v49  ;;  %2679 = vmatpush3.msra.mxu0 %v3810_v57 }
 0x178   :  { %2713 = vmatprep.subr.mxu1 %v3798_v52  ;;  %2680 = vmatprep.subr.mxu0 %v3818_v60 }
 0x179   :  { %2714 = vmatpush3.msra.mxu1 %v3798_v52  ;;  %2681 = vmatpush3.msra.mxu0 %v3818_v60 }
 0x17a   :  { %2715 = vmatprep.subr.mxu1 %v3806_v55  ;;  %2682 = vmatprep.subr.mxu0 %v3826_v3 }
 0x17b   :  { %2716 = vmatpush3.msra.mxu1 %v3806_v55  ;;  %2683 = vmatpush3.msra.mxu0 %v3826_v3 }
 0x17c   :  { %2717 = vmatprep.subr.mxu1 %v3814_v58  ;;  %2684 = vmatprep.subr.mxu0 %v3834_v4 }
 0x17d   :  { %2718 = vmatpush3.msra.mxu1 %v3814_v58  ;;  %2685 = vmatpush3.msra.mxu0 %v3834_v4 }
 0x17e   :  { %2719 = vmatprep.subr.mxu1 %v3822_v61  ;;  %2686 = vmatprep.subr.mxu0 %v3842_v7 }
 0x17f   :  { %2720 = vmatpush3.msra.mxu1 %v3822_v61  ;;  %2687 = vmatpush3.msra.mxu0 %v3842_v7 }
 0x180   :  { %2721 = vmatprep.subr.mxu1 %v3830_v2  ;;  %2688 = vmatprep.subr.mxu0 %v3848_v9 }
 0x181   :  { %2722 = vmatpush3.msra.mxu1 %v3830_v2  ;;  %2689 = vmatpush3.msra.mxu0 %v3848_v9 }
 0x182   :  { %2723 = vmatprep.subr.mxu1 %v3838_v6  ;;  %2690 = vmatprep.subr.mxu0 %v3854_v11 }
 0x183   :  { %2724 = vmatpush3.msra.mxu1 %v3838_v6  ;;  %2691 = vmatpush3.msra.mxu0 %v3854_v11 }
 0x184   :  { %2725 = vmatprep.subr.mxu1 %v3846_v8  ;;  %2692 = vmatprep.subr.mxu0 %v3862_v14 }
 0x185   :  { %2726 = vmatpush3.msra.mxu1 %v3846_v8  ;;  %2693 = vmatpush3.msra.mxu0 %v3862_v14 }
 0x186   :  { %2727 = vmatprep.subr.mxu1 %v3850_v10  ;;  %2694 = vmatprep.subr.mxu0 %v3870_v17 }
 0x187   :  { %2728 = vmatpush3.msra.mxu1 %v3850_v10  ;;  %2695 = vmatpush3.msra.mxu0 %v3870_v17 }
 0x188   :  { %2729 = vmatprep.subr.mxu1 %v3858_v12  ;;  %2696 = vmatprep.subr.mxu0 %v3880_v20 }
 0x189   :  { %2730 = vmatpush3.msra.mxu1 %v3858_v12  ;;  %2697 = vmatpush3.msra.mxu0 %v3880_v20 }
 0x18a   :  { %2731 = vmatprep.subr.mxu1 %v3866_v15  ;;  %2736 = vmatprep.subr.mxu0 %v3884_v21 }
 0x18b   :  { %2732 = vmatpush3.msra.mxu1 %v3866_v15 }
 0x18c   :  { %2771 = vmatprep.subr.mxu1 %v3762_v30 }
 0x22a   :  { %v1046_v18 = vpop.f32.mrf.mxu0 }
 0x22b   :  { %v1050_v25 = vmul.f32 0.001953125, %v1046_v18 }
 0x22c   :  { %v2630_v22 = vpop.f32.mrf.mxu0  ;;  %v1117_v0 = vpop.f32.mrf.mxu1 }
 0x22d   :  { %v1122_v5 = vmul.f32 %v1050_v25, %v1050_v25  ;;  %v1121_v63 = vmul.f32 0.001953125, %v1117_v0  ;;  %v1128_v22 = vld [vmem:[%s4309_s4] sm:$0x1] }
 0x22e   :  { %v2665_v1 = vpop.f32.mrf.mxu1 }
 0x22f   :  { %v1123_v62 = vsub.f32 %v1121_v63, %v1122_v5 }
 0x231   :  { %v1125_v59 = vadd.f32 1e-05, %v1123_v62 }
 0x233   :  { %2954 = vrsqrt.f32 %v1125_v59 }
 0x240   :  { %v2955_v50 = vpop.eup %2954 }
 0x241   :  { %v1127_v47 = vmul.f32 %v2955_v50, %v1124_v56 }
 0x243   :  { %v1129_v18 = vmul.f32 %v1127_v47, %v1050_v25  ;;  %v3897_v0 = vrot.slane %v1127_v47, %v3891_v54  ;;  %v3913_v47 = vld [vmem:[%s4312_s7] ss:$0 sm:$0xff] }
 0x245   :  { %v1130_v63 = vsub.f32 %v1128_v22, %v1129_v18  ;;  %v1138_v5 = vmul.f32 %v3897_v0, %v3723_v48  ;;  %v1139_v13 = vmul.f32 %v3897_v0, %v3720_v45  ;;  %v1480_v50 = vmul.f32 %v3897_v0, %v3739_v24 }
 0x246   :  { %v1481_v56 = vmul.f32 %v3897_v0, %v3736_v16  ;;  %v1140_v62 = vmul.f32 %v3897_v0, %v3718_v42 }
 0x247   :  { %v3902_v59 = vrot.slane %v1130_v63, %v3891_v54 }
 0x249   :  { %v1147_v1 = vadd.f32 %v3902_v59, %v1138_v5  ;;  %v1148_v48 = vadd.f32 %v3902_v59, %v1139_v13  ;;  %v1483_v45 = vadd.f32 %v1480_v50, %v3902_v59  ;;  %v1484_v25 = vadd.f32 %v1481_v56, %v3902_v59 }
 0x24a   :  { %v1149_v24 = vadd.f32 %v3902_v59, %v1140_v62 }
 0x24b   :  { %vm1150_vm0 = vcmp.gt.f32.partialorder %v1147_v1, 0.0  ;;  %v1159_v16 = vmul.f32 %v3913_v47, %v1147_v1  ;;  %vm1151_vm1 = vcmp.gt.f32.partialorder %v1148_v48, 0.0  ;;  %v1160_v22 = vmul.f32 %v3913_v47, %v1148_v48 }
 0x24c   :  { %vm1486_vm2 = vcmp.gt.f32.partialorder %v1483_v45, 0.0  ;;  %vm1487_vm15 = vcmp.gt.f32.partialorder %v1484_v25, 0.0  ;;  %v1489_v42 = vmul.f32 %v3913_v47, %v1483_v45  ;;  %v1490_v18 = vmul.f32 %v3913_v47, %v1484_v25 }
 0x24d   :  { %v1162_v63 = vsel %vm1150_vm0, %v1147_v1, %v1159_v16  ;;  %v3926_v5 = vsel %vm1151_vm1, %v1148_v48, %v1160_v22  ;;  %vm1152_vm14 = vcmp.gt.f32.partialorder %v1149_v24, 0.0  ;;  %v1161_v13 = vmul.f32 %v3913_v47, %v1149_v24 }
 0x24e   :  { %v1165_v50 = vmul.f32 %v3715_v40, %v1162_v63  ;;  %v1492_v56 = vsel %vm1486_vm2, %v1483_v45, %v1489_v42  ;;  %v3930_v62 = vsel %vm1487_vm15, %v1484_v25, %v1490_v18  ;;  %v1205_v41 = vrot.slane %v3926_v5, 1  ;;  %v3952_v42 = vld [vmem:[#allocation5 + $0x170] sm:$0xff]  ;;  %v4046_v63 = vld [vmem:[#allocation5 + $0x100] sm:$0xff] }
 0x24f   :  { %v3933_v54 = vmul.f32 %v3715_v40, %v1492_v56  ;;  %v1164_v44 = vsel %vm1152_vm14, %v1149_v24, %v1161_v13  ;;  %v1502_v16 = vrot.slane %v3930_v62, 1  ;;  %vm4401_vm15 = vcmask 1046528  }
 0x250   :  { %2733 = vmatprep.mubr.f32.mxu1 %v1165_v50  ;;  %v1204_v38 = vrot.slane %v1165_v50, 1  ;;  %v3937_v1 = vmul.f32 %v3712_v34, %v1164_v44  ;;  %v1378_v45 = vrot.slane %v1165_v50, 2  ;;  %v1379_v24 = vrot.slane %v3926_v5, 2  ;;  %vm4402_vm14 = vmmov %vm4401_vm15 }
 0x251   :  { %2734 = vmatmul.mubr.f32.vlgmr.msra.gmra.mxu1 %v3926_v5  ;;  %v1501_v48 = vrot.slane %v3933_v54, 1  ;;  %vm4403_vm0 = vmmov %vm4402_vm14  ;;  %vm4404_vm1 = vcmask 1045504   ;;  %v1482_v18 = vmul.f32 %v3897_v0, %v3744_v33  ;;  %v3992_v33 = vld [vmem:[#allocation5 + $0x140] sm:$0xff]  ;;  %v1659_v13 = vrot.slane %v3930_v62, 2 }
 0x252   :  { %2772 = vmatpush3.msra.mxu1 %v3762_v30  ;;  %v1206_v40 = vsel %vm4401_vm15, %v1204_v38, %v1205_v41  ;;  %v1207_v25 = vrot.slane %v3937_v1, 1  ;;  %v1380_v38 = vsel %vm4404_vm1, %v1378_v45, %v1379_v24  ;;  %v3959_v30 = vld [vmem:[#allocation5 + $0x168] sm:$0xff]  ;;  %vm4405_vm15 = vmmov %vm4403_vm0 }
 0x253   :  { %2773 = vmatprep.subr.mxu1 %v3770_v36  ;;  %2698 = vmatprep.mubr.f32.mxu0 %v1206_v40  ;;  %v1503_v44 = vsel %vm4402_vm14, %v1501_v48, %v1502_v16  ;;  %vm4406_vm14 = vmmov %vm4404_vm1 }
 0x254   :  { %2774 = vmatpush3.msra.mxu1 %v3770_v36  ;;  %2803 = vmatprep.mubr.f32.mxu1 %v1503_v44  ;;  %v1208_v22 = vsel %vm4403_vm0, %v1205_v41, %v1207_v25  ;;  %v3965_v41 = vld [vmem:[#allocation5 + $0x160] sm:$0xff]  ;;  %v3971_v36 = vld [vmem:[#allocation5 + $0x158] sm:$0xff]  ;;  %vm4407_vm0 = vmmov %vm4404_vm1 }
 0x255   :  { %2699 = vmatmul.mubr.f32.vlgmr.msra.gmra.mxu0 %v1208_v22  ;;  %2775 = vmatprep.subr.mxu1 %v3778_v39  ;;  %vm4408_vm1 = vmmov %vm4407_vm0 }
 0x256   :  { %2737 = vmatpush3.msra.mxu0 %v3884_v21  ;;  %2768 = vmatprep.mubr.f32.mxu0 %v1380_v38 }
 0x257   :  { %2738 = vmatprep.subr.mxu0 %v3952_v42  ;;  %2776 = vmatpush3.msra.mxu1 %v3778_v39  ;;  %v3977_v39 = vld [vmem:[#allocation5 + $0x150] sm:$0xff] }
 0x258   :  { %2739 = vmatpush3.msra.mxu0 %v3952_v42  ;;  %2777 = vmatprep.subr.mxu1 %v3786_v46 }
 0x259   :  { %2740 = vmatprep.subr.mxu0 %v3959_v30  ;;  %2778 = vmatpush3.msra.mxu1 %v3786_v46  ;;  %v3985_v46 = vld [vmem:[#allocation5 + $0x148] sm:$0xff] }
 0x25a   :  { %2741 = vmatpush3.msra.mxu0 %v3959_v30  ;;  %2779 = vmatprep.subr.mxu1 %v3794_v51 }
 0x25b   :  { %2742 = vmatprep.subr.mxu0 %v3965_v41  ;;  %2780 = vmatpush3.msra.mxu1 %v3794_v51  ;;  %v1485_v51 = vadd.f32 %v1482_v18, %v3902_v59 }
 0x25c   :  { %2743 = vmatpush3.msra.mxu0 %v3965_v41  ;;  %2781 = vmatprep.subr.mxu1 %v3802_v53 }
 0x25d   :  { %2744 = vmatprep.subr.mxu0 %v3971_v36  ;;  %2782 = vmatpush3.msra.mxu1 %v3802_v53  ;;  %v3998_v53 = vld [vmem:[#allocation5 + $0x138] sm:$0xff]  ;;  %v1491_v0 = vmul.f32 %v3913_v47, %v1485_v51  ;;  %vm1488_vm2 = vcmp.gt.f32.partialorder %v1485_v51, 0.0 }
 0x25e   :  { %2745 = vmatpush3.msra.mxu0 %v3971_v36  ;;  %2783 = vmatprep.subr.mxu1 %v3810_v57  ;;  %v4026_v47 = vld [vmem:[#allocation5 + $0x118] sm:$0xff] }
 0x25f   :  { %2746 = vmatprep.subr.mxu0 %v3977_v39  ;;  %2784 = vmatpush3.msra.mxu1 %v3810_v57  ;;  %v4005_v57 = vld [vmem:[#allocation5 + $0x130] sm:$0xff]  ;;  %v1494_v59 = vsel %vm1488_vm2, %v1485_v51, %v1491_v0 }
 0x260   :  { %2747 = vmatpush3.msra.mxu0 %v3977_v39  ;;  %2785 = vmatprep.subr.mxu1 %v3818_v60 }
 0x261   :  { %2748 = vmatprep.subr.mxu0 %v3985_v46  ;;  %2786 = vmatpush3.msra.mxu1 %v3818_v60  ;;  %v4011_v60 = vld [vmem:[#allocation5 + $0x128] sm:$0xff] }
 0x262   :  { %2749 = vmatpush3.msra.mxu0 %v3985_v46  ;;  %2787 = vmatprep.subr.mxu1 %v3826_v3 }
 0x263   :  { %2750 = vmatprep.subr.mxu0 %v3992_v33  ;;  %2788 = vmatpush3.msra.mxu1 %v3826_v3  ;;  %v4017_v3 = vld [vmem:[#allocation5 + $0x120] sm:$0xff] }
 0x264   :  { %2751 = vmatpush3.msra.mxu0 %v3992_v33  ;;  %2789 = vmatprep.subr.mxu1 %v3834_v4 }
 0x265   :  { %2752 = vmatprep.subr.mxu0 %v3998_v53  ;;  %2790 = vmatpush3.msra.mxu1 %v3834_v4  ;;  %v4022_v4 = vmul.f32 %v3712_v34, %v1494_v59 }
 0x266   :  { %2753 = vmatpush3.msra.mxu0 %v3998_v53  ;;  %2791 = vmatprep.subr.mxu1 %v3842_v7 }
 0x267   :  { %2754 = vmatprep.subr.mxu0 %v4005_v57  ;;  %2792 = vmatpush3.msra.mxu1 %v3842_v7  ;;  %v4032_v7 = vld [vmem:[#allocation5 + $0x110] sm:$0xff]  ;;  %v1504_v34 = vrot.slane %v4022_v4, 1 }
 0x268   :  { %2755 = vmatpush3.msra.mxu0 %v4005_v57  ;;  %2793 = vmatprep.subr.mxu1 %v3848_v9 }
 0x269   :  { %2756 = vmatprep.subr.mxu0 %v4011_v60  ;;  %2794 = vmatpush3.msra.mxu1 %v3848_v9  ;;  %v4039_v9 = vld [vmem:[#allocation5 + $0x108] sm:$0xff] }
 0x26a   :  { %2757 = vmatpush3.msra.mxu0 %v4011_v60  ;;  %2795 = vmatprep.subr.mxu1 %v3854_v11 }
 0x26b   :  { %2758 = vmatprep.subr.mxu0 %v4017_v3  ;;  %2796 = vmatpush3.msra.mxu1 %v3854_v11  ;;  %v1658_v11 = vrot.slane %v3933_v54, 2 }
 0x26c   :  { %2759 = vmatpush3.msra.mxu0 %v4017_v3  ;;  %2797 = vmatprep.subr.mxu1 %v3862_v14 }
 0x26d   :  { %2760 = vmatprep.subr.mxu0 %v4026_v47  ;;  %2798 = vmatpush3.msra.mxu1 %v3862_v14  ;;  %v1505_v14 = vsel %vm4405_vm15, %v1502_v16, %v1504_v34  ;;  %v1660_v50 = vsel %vm4406_vm14, %v1658_v11, %v1659_v13 }
 0x26e   :  { %2761 = vmatpush3.msra.mxu0 %v4026_v47  ;;  %2799 = vmatprep.subr.mxu1 %v3870_v17 }
 0x26f   :  { %2762 = vmatprep.subr.mxu0 %v4032_v7  ;;  %2800 = vmatpush3.msra.mxu1 %v3870_v17  ;;  %v1381_v17 = vrot.slane %v3937_v1, 2 }
 0x270   :  { %2763 = vmatpush3.msra.mxu0 %v4032_v7  ;;  %2801 = vmatprep.subr.mxu1 %v3880_v20 }
 0x271   :  { %2764 = vmatprep.subr.mxu0 %v4039_v9  ;;  %2802 = vmatpush3.msra.mxu1 %v3880_v20  ;;  %v1382_v20 = vsel %vm4407_vm0, %v1379_v24, %v1381_v17 }
 0x272   :  { %2765 = vmatpush3.msra.mxu0 %v4039_v9  ;;  %2804 = vmatmul.mubr.f32.vlgmr.msra.gmra.mxu1 %v1505_v14 }
 0x273   :  { %2841 = vmatprep.subr.mxu1 %v3884_v21  ;;  %2766 = vmatprep.subr.mxu0 %v4046_v63 }
 0x274   :  { %2842 = vmatpush3.msra.mxu1 %v3884_v21  ;;  %2873 = vmatprep.mubr.f32.mxu1 %v1660_v50 }
 0x275   :  { %2767 = vmatpush3.msra.mxu0 %v4046_v63  ;;  %2843 = vmatprep.subr.mxu1 %v3952_v42 }
 0x276   :  { %2769 = vmatmul.mubr.f32.vlgmr.msra.gmra.mxu0 %v1382_v20  ;;  %2806 = vmatprep.subr.mxu0 %v3755_v27 }
 0x277   :  { %2844 = vmatpush3.msra.mxu1 %v3952_v42  ;;  %2807 = vmatpush3.msra.mxu0 %v3755_v27 }
 0x278   :  { %2838 = vmatprep.mubr.f32.mxu0 %v3933_v54  ;;  %2845 = vmatprep.subr.mxu1 %v3959_v30  ;;  %v1661_v54 = vrot.slane %v4022_v4, 2 }
 0x279   :  { %2808 = vmatprep.subr.mxu0 %v3759_v28  ;;  %2846 = vmatpush3.msra.mxu1 %v3959_v30 }
 0x27a   :  { %2809 = vmatpush3.msra.mxu0 %v3759_v28  ;;  %2847 = vmatprep.subr.mxu1 %v3965_v41  ;;  %v1662_v27 = vsel %vm4408_vm1, %v1659_v13, %v1661_v54  ;;  %v4409_v28 = vmov 0.0  }
 0x27b   :  { %2810 = vmatprep.subr.mxu0 %v3766_v31  ;;  %2848 = vmatpush3.msra.mxu1 %v3965_v41 }
 0x27c   :  { %2811 = vmatpush3.msra.mxu0 %v3766_v31  ;;  %2849 = vmatprep.subr.mxu1 %v3971_v36  ;;  %v4410_v31 = vmov 1.0  }
 0x27d   :  { %2812 = vmatprep.subr.mxu0 %v3774_v37  ;;  %2850 = vmatpush3.msra.mxu1 %v3971_v36 }
 0x27e   :  { %2813 = vmatpush3.msra.mxu0 %v3774_v37  ;;  %2851 = vmatprep.subr.mxu1 %v3977_v39  ;;  %v4418_v37 = vld [vmem:[#allocation19_spill] sm:$0xff] }
 0x27f   :  { %2814 = vmatprep.subr.mxu0 %v3782_v43  ;;  %2852 = vmatpush3.msra.mxu1 %v3977_v39 }
 0x280   :  { %2815 = vmatpush3.msra.mxu0 %v3782_v43  ;;  %2853 = vmatprep.subr.mxu1 %v3985_v46  ;;  %v4420_v43 = vld [vmem:[#allocation20_spill] sm:$0xff] }
 0x281   :  { %2816 = vmatprep.subr.mxu0 %v3790_v49  ;;  %2854 = vmatpush3.msra.mxu1 %v3985_v46 }
 0x282   :  { %2817 = vmatpush3.msra.mxu0 %v3790_v49  ;;  %2855 = vmatprep.subr.mxu1 %v3992_v33  ;;  %v4423_v49 = vld [vmem:[#allocation21_spill] sm:$0xff] }
 0x283   :  { %2818 = vmatprep.subr.mxu0 %v3798_v52  ;;  %2856 = vmatpush3.msra.mxu1 %v3992_v33 }
 0x284   :  { %2819 = vmatpush3.msra.mxu0 %v3798_v52  ;;  %2857 = vmatprep.subr.mxu1 %v3998_v53  ;;  %v4425_v52 = vld [vmem:[#allocation22_spill] sm:$0xff] }
 0x285   :  { %2820 = vmatprep.subr.mxu0 %v3806_v55  ;;  %2858 = vmatpush3.msra.mxu1 %v3998_v53 }
 0x286   :  { %2821 = vmatpush3.msra.mxu0 %v3806_v55  ;;  %2859 = vmatprep.subr.mxu1 %v4005_v57 }
 0x287   :  { %2822 = vmatprep.subr.mxu0 %v3814_v58  ;;  %2860 = vmatpush3.msra.mxu1 %v4005_v57 }
 0x288   :  { %2823 = vmatpush3.msra.mxu0 %v3814_v58  ;;  %2861 = vmatprep.subr.mxu1 %v4011_v60 }
 0x289   :  { %2824 = vmatprep.subr.mxu0 %v3822_v61  ;;  %2862 = vmatpush3.msra.mxu1 %v4011_v60 }
 0x28a   :  { %2825 = vmatpush3.msra.mxu0 %v3822_v61  ;;  %2863 = vmatprep.subr.mxu1 %v4017_v3 }
 0x28b   :  { %2826 = vmatprep.subr.mxu0 %v3830_v2  ;;  %2864 = vmatpush3.msra.mxu1 %v4017_v3 }
 0x28c   :  { %2827 = vmatpush3.msra.mxu0 %v3830_v2  ;;  %2865 = vmatprep.subr.mxu1 %v4026_v47 }
 0x28d   :  { %2828 = vmatprep.subr.mxu0 %v3838_v6  ;;  %2866 = vmatpush3.msra.mxu1 %v4026_v47 }
 0x28e   :  { %2829 = vmatpush3.msra.mxu0 %v3838_v6  ;;  %2867 = vmatprep.subr.mxu1 %v4032_v7 }
 0x28f   :  { %2830 = vmatprep.subr.mxu0 %v3846_v8  ;;  %2868 = vmatpush3.msra.mxu1 %v4032_v7 }
 0x290   :  { %2831 = vmatpush3.msra.mxu0 %v3846_v8  ;;  %2869 = vmatprep.subr.mxu1 %v4039_v9 }
 0x291   :  { %2832 = vmatprep.subr.mxu0 %v3850_v10  ;;  %2870 = vmatpush3.msra.mxu1 %v4039_v9 }
 0x292   :  { %2833 = vmatpush3.msra.mxu0 %v3850_v10  ;;  %2871 = vmatprep.subr.mxu1 %v4046_v63 }
 0x293   :  { %2834 = vmatprep.subr.mxu0 %v3858_v12  ;;  %2872 = vmatpush3.msra.mxu1 %v4046_v63 }
 0x294   :  { %2835 = vmatpush3.msra.mxu0 %v3858_v12  ;;  %2874 = vmatmul.mubr.f32.vlgmr.msra.gmra.mxu1 %v1662_v27 }
 0x295   :  { %2836 = vmatprep.subr.mxu0 %v3866_v15  ;;  %2911 = vmatprep.subr.mxu1 %v4409_v28 }
 0x296   :  { %2837 = vmatpush3.msra.mxu0 %v3866_v15  ;;  %2912 = vmatpush3.msk.msra.mxu1 %vm3491_vm3, %v4410_v31 }
 0x297   :  { %2839 = vmatmul.mubr.f32.vlgmr.msra.gmra.mxu0 %v3930_v62  ;;  %2876 = vmatprep.subr.mxu0 %v4409_v28 }
 0x298   :  { %2877 = vmatpush3.msk.msra.mxu0 %vm3491_vm3, %v4410_v31  ;;  %2913 = vmatprep.subr.mxu1 %v4409_v28  ;;  %vm4417_vm3 = vnez %v4416_v35 }
 0x299   :  { %2878 = vmatprep.subr.mxu0 %v4409_v28  ;;  %2914 = vmatpush3.msk.msra.mxu1 %vm3504_vm4, %v4410_v31 }
 0x29a   :  { %2879 = vmatpush3.msk.msra.mxu0 %vm3504_vm4, %v4410_v31  ;;  %2915 = vmatprep.subr.mxu1 %v4409_v28  ;;  %vm4419_vm4 = vnez %v4418_v37 }
 0x29b   :  { %2880 = vmatprep.subr.mxu0 %v4409_v28  ;;  %2916 = vmatpush3.msk.msra.mxu1 %vm3518_vm5, %v4410_v31 }
 0x29c   :  { %2881 = vmatpush3.msk.msra.mxu0 %vm3518_vm5, %v4410_v31  ;;  %2917 = vmatprep.subr.mxu1 %v4409_v28  ;;  %vm4421_vm5 = vnez %v4420_v43 }
 0x29d   :  { %2882 = vmatprep.subr.mxu0 %v4409_v28  ;;  %2918 = vmatpush3.msk.msra.mxu1 %vm3532_vm6, %v4410_v31 }
 0x29e   :  { %2883 = vmatpush3.msk.msra.mxu0 %vm3532_vm6, %v4410_v31  ;;  %2919 = vmatprep.subr.mxu1 %v4409_v28  ;;  %vm4422_vm6 = vmmov 0  }
 0x29f   :  { %2884 = vmatprep.subr.mxu0 %v4409_v28  ;;  %2920 = vmatpush3.msk.msra.mxu1 %vm3546_vm7, %v4410_v31 }
 0x2a0   :  { %2885 = vmatpush3.msk.msra.mxu0 %vm3546_vm7, %v4410_v31  ;;  %2921 = vmatprep.subr.mxu1 %v4409_v28  ;;  %vm4424_vm7 = vnez %v4423_v49 }
 0x2a1   :  { %2886 = vmatprep.subr.mxu0 %v4409_v28  ;;  %2922 = vmatpush3.msk.msra.mxu1 %vm3560_vm8, %v4410_v31 }
 0x2a2   :  { %2887 = vmatpush3.msk.msra.mxu0 %vm3560_vm8, %v4410_v31  ;;  %2923 = vmatprep.subr.mxu1 %v4409_v28  ;;  %vm4426_vm8 = vnez %v4425_v52  ;;  %v1904_v52 = vld [vmem:[%s4310_s5] sm:$0x1] }
 0x2a3   :  { %2888 = vmatprep.subr.mxu0 %v4409_v28  ;;  %2924 = vmatpush3.msk.msra.mxu1 %vm3574_vm9, %v4410_v31 }
 0x2a4   :  { %2889 = vmatpush3.msk.msra.mxu0 %vm3574_vm9, %v4410_v31  ;;  %2925 = vmatprep.subr.mxu1 %v4409_v28  ;;  %vm4428_vm9 = vmmov %vm4407_vm0 }
 0x2a5   :  { %2890 = vmatprep.subr.mxu0 %v4409_v28  ;;  %2926 = vmatpush3.msk.msra.mxu1 %vm3588_vm10, %v4410_v31 }
 0x2a6   :  { %2891 = vmatpush3.msk.msra.mxu0 %vm3588_vm10, %v4410_v31  ;;  %2927 = vmatprep.subr.mxu1 %v4409_v28  ;;  %vm4429_vm10 = vmmov %vm4407_vm0 }
 0x2a7   :  { %2892 = vmatprep.subr.mxu0 %v4409_v28  ;;  %2928 = vmatpush3.msk.msra.mxu1 %vm3602_vm11, %v4410_v31 }
 0x2a8   :  { %2893 = vmatpush3.msk.msra.mxu0 %vm3602_vm11, %v4410_v31  ;;  %2929 = vmatprep.subr.mxu1 %v4409_v28 }
 0x2a9   :  { %2894 = vmatprep.subr.mxu0 %v4409_v28  ;;  %2930 = vmatpush3.msk.msra.mxu1 %vm3616_vm12, %v4410_v31 }
 0x2aa   :  { %2895 = vmatpush3.msk.msra.mxu0 %vm3616_vm12, %v4410_v31  ;;  %2931 = vmatprep.subr.mxu1 %v4409_v28 }
 0x2ab   :  { %2896 = vmatprep.subr.mxu0 %v4409_v28  ;;  %2932 = vmatpush3.msk.msra.mxu1 %vm3630_vm13, %v4410_v31 }
 0x2ac   :  { %2897 = vmatpush3.msk.msra.mxu0 %vm3630_vm13, %v4410_v31  ;;  %2933 = vmatprep.subr.mxu1 %v4409_v28 }
 0x2ad   :  { %2898 = vmatprep.subr.mxu0 %v4409_v28  ;;  %2934 = vmatpush3.msk.msra.mxu1 %vm4417_vm3, %v4410_v31 }
 0x2ae   :  { %2899 = vmatpush3.msk.msra.mxu0 %vm4417_vm3, %v4410_v31  ;;  %2935 = vmatprep.subr.mxu1 %v4409_v28 }
 0x2af   :  { %2900 = vmatprep.subr.mxu0 %v4409_v28  ;;  %2936 = vmatpush3.msk.msra.mxu1 %vm4419_vm4, %v4410_v31 }
 0x2b0   :  { %2901 = vmatpush3.msk.msra.mxu0 %vm4419_vm4, %v4410_v31  ;;  %2937 = vmatprep.subr.mxu1 %v4409_v28 }
 0x2b1   :  { %2902 = vmatprep.subr.mxu0 %v4409_v28  ;;  %2938 = vmatpush3.msk.msra.mxu1 %vm4421_vm5, %v4410_v31 }
 0x2b2   :  { %2903 = vmatpush3.msk.msra.mxu0 %vm4421_vm5, %v4410_v31  ;;  %2939 = vmatprep.subr.mxu1 %v4409_v28 }
 0x2b3   :  { %2904 = vmatprep.subr.mxu0 %v4409_v28  ;;  %2908 = vmatprep.mubr.msk.f32.mxu0 %vm4422_vm6, %v4409_v28 }
 0x2b4   :  { %2905 = vmatpush3.msk.msra.mxu0 %vm4424_vm7, %v4410_v31  ;;  %2940 = vmatpush3.msk.msra.mxu1 %vm4424_vm7, %v4410_v31 }
 0x2b5   :  { %2906 = vmatprep.subr.mxu0 %v4409_v28  ;;  %2941 = vmatprep.subr.mxu1 %v4409_v28 }
 0x2b6   :  { %2907 = vmatpush3.msk.msra.mxu0 %vm4426_vm8, %v4410_v31  ;;  %2942 = vmatpush3.msk.msra.mxu1 %vm4426_vm8, %v4410_v31 }
 0x2b7   :  { %2943 = vmatprep.mubr.msk.f32.mxu1 %vm4422_vm6, %v4409_v28 }
 0x311   :  { %v2735_v61 = vpop.f32.mrf.mxu1 }
 0x313   :  { %v1352_v6 = vpop.f32.mrf.mxu1 }
 0x315   :  { %v2700_v55 = vpop.f32.mrf.mxu0 }
 0x316   :  { %v1358_v12 = vadd.f32 %v2735_v61, %v2700_v55  ;;  %v2057_v61 = vld [vmem:[%s4305_s0 + $0x18] sm:$0xff] }
 0x317   :  { %v1277_v58 = vpop.f32.mrf.mxu0 }
 0x318   :  { %v1353_v10 = vadd.f32 %v1352_v6, %v1277_v58  ;;  %v2059_v6 = vld [vmem:[%s4305_s0 + $0x28] sm:$0xf] }
 0x332   :  { %v2805_v56 = vpop.f32.mrf.mxu1 }
 0x334   :  { %v1574_v16 = vpop.f32.mrf.mxu1 }
 0x336   :  { %v2770_v2 = vpop.f32.mrf.mxu0 }
 0x337   :  { %v4268_v21 = vadd.f32 %v2770_v2, %v1358_v12  ;;  %v2058_v2 = vld [vmem:[%s4305_s0 + $0x20] sm:$0xff]  ;;  %s3031_s0 = smov [#allocation7]  }
 0x338   :  { %v1451_v8 = vpop.f32.mrf.mxu0  ;;  %v4427_v12 = vld [vmem:[#allocation23_spill] sm:$0xff]  ;;  %s1958_s5 = sshll.u32 %s3031_s0, 4  ;;  %s1959_s5 = int_to_ptr.vmem [resolvable:$true] %s1958_s5 }
 0x339   :  { %v4266_v15 = vadd.f32 %v1451_v8, %v1353_v10  ;;  %v1471_v62 = vmul.f32 %v4268_v21, %v4268_v21  ;;  %v1908_v8 = vld [vmem:[%s4311_s6] sm:$0x1]  ;;  %s2998_s6 = scalar_lea.vmem %s1959_s5, 512  ;;  %p3003_p11 = scmp.lt.s32.totalorder %s1959_s5, %s1959_s5 }
 0x33a   :  { %p2999_p10 = scmp.ne.s32.totalorder %s1959_s5, %s2998_s6  ;;  %p3004_p12 = scmp.lt.s32.totalorder %s2998_s6, %s2998_s6 }
 0x33b   :  { %v1470_v5 = vmul.f32 %v4266_v15, %v4266_v15  ;;  %v1462_v1 = vadd.f32 %v4268_v21, %v4266_v15 }
 0x33c   :  { %p3005_p13 = por %p3004_p12, %p3003_p11 }
 0x33d   :  { %v1472_v48 = vadd.f32 %v1471_v62, %v1470_v5  ;;  %v1463_v45 = vrot.slane %v1462_v1, 4  ;;  %v1942_v62 = vrot.slane %v2058_v2, 2 }
 0x33e   :  { %p3006_p0 = pnand %p3005_p13, %p2999_p10 }
 0x33f   :  { %v1473_v24 = vrot.slane %v1472_v48, 4  ;;  %v1464_v42 = vadd.f32 %v1463_v45, %v1462_v1  ;;  %v1944_v1 = vrot.slane %v2059_v6, 2 }
 0x341   :  { %v1474_v36 = vadd.f32 %v1473_v24, %v1472_v48  ;;  %v1465_v18 = vrot.slane %v1464_v42, 2 }
 0x343   :  { %v1475_v53 = vrot.slane %v1474_v36, 2  ;;  %v1466_v60 = vadd.f32 %v1465_v18, %v1464_v42  ;;  %v4430_v18 = vld [vmem:[#allocation11_spill] sm:$0xff] }
 0x345   :  { %v1476_v4 = vadd.f32 %v1475_v53, %v1474_v36  ;;  %v1467_v34 = vrot.slane %v1466_v60, 1 }
 0x347   :  { %v1477_v14 = vrot.slane %v1476_v4, 1  ;;  %v1468_v17 = vadd.f32 %v1467_v34, %v1466_v60 }
 0x349   :  { %v1478_v27 = vadd.f32 %v1477_v14, %v1476_v4 }
 0x354   :  { %v2875_v40 = vpop.f32.mrf.mxu1 }
 0x356   :  { %v1731_v41 = vpop.f32.mrf.mxu1 }
 0x357   :  { %v2840_v25 = vpop.f32.mrf.mxu0 }
 0x358   :  { %v1655_v44 = vadd.f32 %v2840_v25, %v2805_v56  ;;  %v1941_v56 = vrot.slane %v2057_v61, 2 }
 0x359   :  { %v1649_v22 = vpop.f32.mrf.mxu0 }
 0x35a   :  { %v1741_v38 = vadd.f32 %v2875_v40, %v1655_v44  ;;  %v1650_v30 = vadd.f32 %v1649_v22, %v1574_v16  ;;  %v1943_v44 = vsel %vm4428_vm9, %v1941_v56, %v1942_v62  ;;  %v1945_v22 = vsel %vm4429_vm10, %v1942_v62, %v1944_v1 }
 0x35c   :  { %v1740_v39 = vadd.f32 %v1731_v41, %v1650_v30  ;;  %v1751_v46 = vmul.f32 %v1741_v38, %v1741_v38 }
 0x35e   :  { %v1742_v51 = vadd.f32 %v1741_v38, %v1740_v39  ;;  %v1750_v33 = vmul.f32 %v1740_v39, %v1740_v39 }
 0x360   :  { %v1743_v0 = vrot.slane %v1742_v51, 4  ;;  %v1752_v57 = vadd.f32 %v1751_v46, %v1750_v33 }
 0x362   :  { %v1744_v59 = vadd.f32 %v1743_v0, %v1742_v51  ;;  %v1753_v3 = vrot.slane %v1752_v57, 4  ;;  %v4431_v51 = vld [vmem:[#allocation12_spill] sm:$0xff] }
 0x364   :  { %v1745_v47 = vrot.slane %v1744_v59, 2  ;;  %v1754_v7 = vadd.f32 %v1753_v3, %v1752_v57 }
 0x366   :  { %v1746_v9 = vadd.f32 %v1745_v47, %v1744_v59  ;;  %v1755_v11 = vrot.slane %v1754_v7, 2 }
 0x368   :  { %v1747_v63 = vrot.slane %v1746_v9, 1  ;;  %v1756_v13 = vadd.f32 %v1755_v11, %v1754_v7 }
 0x36a   :  { %v1748_v50 = vadd.f32 %v1747_v63, %v1746_v9  ;;  %v1757_v20 = vrot.slane %v1756_v13, 1 }
 0x36c   :  { %v1749_v54 = vadd.f32 %v1748_v50, %v1468_v17  ;;  %v1758_v28 = vadd.f32 %v1757_v20, %v1756_v13 }
 0x36e   :  { %2909 = vmatmul.mubr.f32.vlgmr.msra.gmra.mxu0 %v1749_v54  ;;  %v1759_v31 = vadd.f32 %v1758_v28, %v1478_v27 }
 0x370   :  { %2944 = vmatmul.mubr.f32.vlgmr.msra.gmra.mxu1 %v1759_v31 }
 0x42e   :  { %v1826_v19 = vpop.f32.mrf.mxu0 }
 0x42f   :  { %v1830_v23 = vmul.f32 0.001953125, %v1826_v19 }
 0x430   :  { %v2910_v26 = vpop.f32.mrf.mxu0  ;;  %v1897_v29 = vpop.f32.mrf.mxu1 }
 0x431   :  { %v1902_v32 = vmul.f32 %v1830_v23, %v1830_v23  ;;  %v1901_v35 = vmul.f32 0.001953125, %v1897_v29 }
 0x432   :  { %v2945_v37 = vpop.f32.mrf.mxu1 }
 0x433   :  { %v1903_v43 = vsub.f32 %v1901_v35, %v1902_v32 }
 0x435   :  { %v1905_v49 = vadd.f32 1e-05, %v1903_v43 }
 0x437   :  { %2956 = vrsqrt.f32 %v1905_v49 }
 0x444   :  { %v2957_v55 = vpop.eup %2956 }
 0x445   :  { %v1907_v58 = vmul.f32 %v2957_v55, %v1904_v52 }
 0x447   :  { %v1909_v10 = vmul.f32 %v1907_v58, %v1830_v23  ;;  %v1915_v5 = vrot.slane %v1907_v58, %v4427_v12 }
 0x449   :  { %v1910_v48 = vsub.f32 %v1908_v8, %v1909_v10  ;;  %v1917_v16 = vmul.f32 %v1915_v5, %v4266_v15  ;;  %v1918_v45 = vmul.f32 %v1915_v5, %v4268_v21  ;;  %v1931_v25 = vmul.f32 %v1915_v5, %v1740_v39 }
 0x44a   :  { %v1932_v24 = vmul.f32 %v1915_v5, %v1741_v38 }
 0x44b   :  { %v1923_v40 = vrot.slane %v1910_v48, %v4427_v12 }
 0x44d   :  { %v1925_v42 = vadd.f32 %v1923_v40, %v1917_v16  ;;  %v1926_v30 = vadd.f32 %v1923_v40, %v1918_v45  ;;  %v1933_v41 = vadd.f32 %v1931_v25, %v1923_v40  ;;  %v1934_v36 = vadd.f32 %v1932_v24, %v1923_v40 }
 0x44f   :  { %v1927_v46 = vadd.f32 %v1925_v42, %v4430_v18  ;;  %v1928_v15 = vadd.f32 %v1926_v30, %v4431_v51  ;;  %v1948_v33 = vadd.f32 %v1943_v44, %v1933_v41  ;;  %v1949_v21 = vadd.f32 %v1945_v22, %v1934_v36 }
 0x451   :  { %1929 = vst [vmem:[#allocation7] sm:$0xff] %v1927_v46  ;;  %1930 = vst [vmem:[#allocation7 + $0x8] sm:$0xff] %v1928_v15 }
 0x452   :  { %1951 = vst [vmem:[#allocation7 + $0x10] sm:$0xff] %v1948_v33  ;;  %1952 = vst [vmem:[#allocation7 + $0x18] sm:$0xff] %v1949_v21 }
 0x453   :  { %3009 = shalt.err (!%p3006_p0)
}
 0x454   :  { %1964 = dma.vmem_to_hbm [thread:$0]  %s1959_s5, 512, %s4313_s8, [#allocation4], %s3025_s30, %s3025_s30, %s3026_s9  }
 0x455   :  { %3022 = dma.done.wait [#allocation4], 512  }
 0x456   :  { %3023 = vsyncadd [#allocation4], 4294966784 }
 0x457   :  { %1968 = vsyncpa [#allocation3], 1 }
 0x458   :  { %1969 = vsyncpa [#allocation6], 1 }
 0x459   :  { %1970 = vsyncpa [#allocation4], 1 }

</bundles_post_ra>
